<compile_context>
chip_gen: v6e
topology: v6e:2x2x1
jax: 0.10.0
libtpu: 0.0.40
codegen_flags: <defaults>
</compile_context>

<pallas_src>
import jax
import jax.numpy as jnp
from jax.experimental import pallas as pl
from jax.experimental.pallas import tpu as pltpu


# ---------------------------------------------------------------------------
# Fused Pallas kernel (single grid step, whole batch resident in VMEM)
# ---------------------------------------------------------------------------
def _decoder_fused_kernel(x_ref, uh_ref, a1_ref, b1_ref, a2_ref, b2_ref,
                          mask_ref, o_ref, pad1_ref, pad2_ref):
    # Shapes (example N=2, Cin=4, Cmid=Cout=8, Hin=Win=16, Hout=Wout=32, PADH=Hout+2):
    #   x_ref   : (N*Hin, Win*Cin)            all images stacked along rows (lane-dense)
    #   uh_ref  : (N*PADH, N*Hin)             block-diag H-upsample incl. zero halo rows
    #   a1_ref  : (3, Win*Cin, Wout*Cmid)     conv1 band matrices, bf16 (W-upsample+BN folded)
    #   b1_ref  : (1, Wout*Cmid)              conv1 folded BN bias (tiled over W)
    #   a2_ref  : (3, Wout*Cmid, Wout*Cout)   conv2 band matrices, bf16 (BN folded)
    #   b2_ref  : (1, Wout*Cout)              conv2 folded BN bias
    #   mask_ref: (N*PADH-2, 1)               1.0 on valid rows, 0.0 on inter-image rows
    #   o_ref   : (N, Hout, Wout*Cout)
    #   pad1_ref: (N*PADH, Win*Cin)   f32 VMEM scratch (conv1 LHS with halos)
    #   pad2_ref: (N*PADH, Wout*Cmid) f32 VMEM scratch (conv2 LHS with halos)
    p_rows = pad1_ref.shape[0]          # N*(Hout+2)
    m_rows = p_rows - 2                 # rows produced by each banded conv
    n_img, h_out, _ = o_ref.shape
    padh = h_out + 2

    def mm(a, b):
        return jnp.dot(a, b, preferred_element_type=jnp.float32)

    def band_conv(pad_ref, a_ref):
        # 3x3 conv as 3 MXU matmuls (one per dy tap); dx taps + W zero-padding are
        # folded into the band matrices. Operands fed to the MXU as bf16, f32 accum.
        acc = mm(pad_ref[pl.ds(0, m_rows), :].astype(jnp.bfloat16), a_ref[0])
        acc += mm(pad_ref[pl.ds(1, m_rows), :].astype(jnp.bfloat16), a_ref[1])
        acc += mm(pad_ref[pl.ds(2, m_rows), :].astype(jnp.bfloat16), a_ref[2])
        return acc

    # --- bilinear upsample (align_corners=True), H direction only -------------
    # The block-diagonal matrix already inserts the per-image zero halo rows, so
    # conv1's padded LHS falls straight out of this matmul.
    pad1_ref[...] = mm(uh_ref[...], x_ref[...])          # (N*PADH, Win*Cin) f32

    # --- conv1 (3x3, pad=1; W-upsample + BN folded into a1) + ReLU ------------
    y1 = band_conv(pad1_ref, a1_ref)                     # (N*PADH-2, Wout*Cmid) f32
    y1 = jnp.maximum(y1 + b1_ref[...], 0.0) * mask_ref[...]   # mask zeroes inter-image rows

    # --- re-pad for conv2: masked rows shifted down by one are exactly the halos
    zero_row = jnp.zeros((1, pad2_ref.shape[1]), jnp.float32)
    pad2_ref[pl.ds(0, 1), :] = zero_row
    pad2_ref[pl.ds(p_rows - 1, 1), :] = zero_row
    pad2_ref[pl.ds(1, m_rows), :] = y1

    # --- conv2 (3x3, pad=1; BN folded) + ReLU ---------------------------------
    y2 = band_conv(pad2_ref, a2_ref)                     # (N*PADH-2, Wout*Cout) f32
    y2 = jnp.maximum(y2 + b2_ref[...], 0.0)

    # --- write back the Hout valid rows of each image (static small-N unroll) --
    for n in range(n_img):
        r0 = n * padh
        o_ref[n] = y2[r0:r0 + h_out, :].astype(o_ref.dtype)


# ---------------------------------------------------------------------------
# One-time host-side weight preprocessing (hoisted out of the forward pass)
# ---------------------------------------------------------------------------
def _fold_bn(w_hwio, gamma, beta, mean, var, eps=1e-5):
    """Fold eval-mode BatchNorm into conv weights; return (folded_w, bias)."""
    s = gamma / jnp.sqrt(var + eps)
    return w_hwio * s[None, None, None, :], beta - mean * s


def _upsample_matrix(n_in, n_out):
    """Bilinear interpolation matrix (n_out, n_in), align_corners=True."""
    if n_out == 1:  # guard the (n_out - 1) == 0 path (size=(1, ...) argument)
        return jnp.zeros((1, n_in), jnp.float32).at[0, 0].set(1.0)
    pos = jnp.arange(n_out, dtype=jnp.float32) * ((n_in - 1) / (n_out - 1))
    i0 = jnp.floor(pos).astype(jnp.int32)
    i1 = jnp.minimum(i0 + 1, n_in - 1)
    f = pos - i0.astype(jnp.float32)
    rows = jnp.arange(n_out)
    u = jnp.zeros((n_out, n_in), jnp.float32)
    u = u.at[rows, i0].add(1.0 - f)
    u = u.at[rows, i1].add(f)
    return u


def _band_matrices(w_hwio, width):
    """Banded matrices folding the dx taps + W zero-padding of a 3x3 conv.

    w_hwio: (3, 3, Cin, Cout).  Returns (3, width*Cin, width*Cout) with
    A[dy, v*Cin+ci, w*Cout+co] = w_hwio[dy, v-w+1, ci, co] if 0 <= v-w+1 < 3 else 0.
    """
    cin, cout = w_hwio.shape[2], w_hwio.shape[3]
    v = jnp.arange(width)[:, None]
    w = jnp.arange(width)[None, :]
    d = v - w + 1                                      # (W, W) dx tap index
    in_band = (d >= 0) & (d < 3)
    sel = jnp.where(in_band, d, 0)
    mats = []
    for dy in range(3):
        taps = jnp.take(w_hwio[dy], sel, axis=0)       # (W, W, Cin, Cout)
        taps = jnp.where(in_band[:, :, None, None], taps, 0.0)
        a = jnp.transpose(taps, (0, 2, 1, 3)).reshape(width * cin, width * cout)
        mats.append(a)
    return jnp.stack(mats, axis=0)


def precompute_decoder_constants(params, batch, h_in, w_in,
                                 up_sample=True, size=None, eps=1e-5):
    """One-time prep: fold BN (eval mode), build upsample/band matrices (bf16) + mask."""
    cin, cmid = params["w1"].shape[2], params["w1"].shape[3]
    cout = params["w2"].shape[3]
    if up_sample:
        h_out, w_out = (2 * h_in, 2 * w_in) if size is None else size
    else:
        h_out, w_out = h_in, w_in
    padh = h_out + 2

    uh = _upsample_matrix(h_in, h_out) if up_sample else jnp.eye(h_in, dtype=jnp.float32)
    uw = _upsample_matrix(w_in, w_out) if up_sample else jnp.eye(w_in, dtype=jnp.float32)
    uwc = jnp.kron(uw.T, jnp.eye(cin, dtype=jnp.float32))      # (Win*Cin, Wout*Cin)

    # Block-diagonal H-upsample with per-image zero halo rows folded in:
    # row n*PADH + 1 + h applies uh[h] to image n's rows.
    base = jnp.zeros((padh, h_in), jnp.float32).at[1:h_out + 1, :].set(uh)
    uh_pad = jnp.kron(jnp.eye(batch, dtype=jnp.float32), base)  # (N*PADH, N*Hin)

    w1f, b1 = _fold_bn(params["w1"], params["bn1_gamma"], params["bn1_beta"],
                       params["bn1_mean"], params["bn1_var"], eps)
    w2f, b2 = _fold_bn(params["w2"], params["bn2_gamma"], params["bn2_beta"],
                       params["bn2_mean"], params["bn2_var"], eps)

    a1 = _band_matrices(w1f, w_out)                    # (3, Wout*Cin,  Wout*Cmid)
    # Fold the W-direction upsample into conv1's band matrices (K: Wout*Cin -> Win*Cin).
    a1f = jnp.einsum("kp,dpq->dkq", uwc, a1)           # (3, Win*Cin, Wout*Cmid)
    a2 = _band_matrices(w2f, w_out)                    # (3, Wout*Cmid, Wout*Cout)

    b1r = jnp.tile(b1, w_out).reshape(1, w_out * cmid).astype(jnp.float32)
    b2r = jnp.tile(b2, w_out).reshape(1, w_out * cout).astype(jnp.float32)

    rows = jnp.arange(batch * padh - 2)
    mask = ((rows % padh) < h_out).astype(jnp.float32).reshape(-1, 1)

    return {
        "uh_pad": uh_pad.astype(jnp.float32),
        "a1": a1f.astype(jnp.bfloat16),
        "b1": b1r,
        "a2": a2.astype(jnp.bfloat16),
        "b2": b2r,
        "mask": mask,
        "dims": (batch, cin, cmid, cout, h_in, w_in, h_out, w_out),
    }


# ---------------------------------------------------------------------------
# Decoder forward (thin wrapper around the single fused pallas_call)
# ---------------------------------------------------------------------------
def decoder_forward(x_nchw, consts):
    batch, cin, cmid, cout, h_in, w_in, h_out, w_out = consts["dims"]
    padh = h_out + 2
    p_rows = batch * padh
    m_rows = p_rows - 2

    # NCHW -> lane-dense (N*Hin, Win*Cin) slab (images stacked along rows).
    x = jnp.transpose(x_nchw, (0, 2, 3, 1)).reshape(batch * h_in, w_in * cin)
    x = x.astype(jnp.float32)

    flops = 2 * (p_rows * (batch * h_in) * (w_in * cin)
                 + 3 * m_rows * (w_in * cin) * (w_out * cmid)
                 + 3 * m_rows * (w_out * cmid) * (w_out * cout))
    bytes_accessed = int(
        x.size * 4 + consts["uh_pad"].size * 4
        + consts["a1"].size * 2 + consts["a2"].size * 2
        + consts["b1"].size * 4 + consts["b2"].size * 4
        + consts["mask"].size * 4
        + batch * h_out * w_out * cout * 4)

    # Whole batch in ONE grid step: no per-step overhead on the single-TC v5e/v6e,
    # weights read from HBM once, and all matmuls run with M = N*(Hout+2)-2.
    # (For large N, reintroduce a "parallel" batch-chunk grid axis for v7x's 2 TCs.)
    out2d = pl.pallas_call(
        _decoder_fused_kernel,
        out_shape=jax.ShapeDtypeStruct((batch, h_out, w_out * cout), jnp.float32),
        grid_spec=pltpu.PrefetchScalarGridSpec(
            num_scalar_prefetch=0,
            grid=(1,),
            in_specs=[
                pl.BlockSpec((batch * h_in, w_in * cin), lambda i: (0, 0)),
                pl.BlockSpec((p_rows, batch * h_in), lambda i: (0, 0)),
                pl.BlockSpec((3, w_in * cin, w_out * cmid), lambda i: (0, 0, 0)),
                pl.BlockSpec((1, w_out * cmid), lambda i: (0, 0)),
                pl.BlockSpec((3, w_out * cmid, w_out * cout), lambda i: (0, 0, 0)),
                pl.BlockSpec((1, w_out * cout), lambda i: (0, 0)),
                pl.BlockSpec((m_rows, 1), lambda i: (0, 0)),
            ],
            out_specs=pl.BlockSpec((batch, h_out, w_out * cout), lambda i: (0, 0, 0)),
            scratch_shapes=[
                pltpu.VMEM((p_rows, w_in * cin), jnp.float32),
                pltpu.VMEM((p_rows, w_out * cmid), jnp.float32),
            ],
        ),
        compiler_params=pltpu.CompilerParams(
            dimension_semantics=("arbitrary",)),
        cost_estimate=pl.CostEstimate(
            flops=flops, transcendentals=0, bytes_accessed=bytes_accessed),
    )(x, consts["uh_pad"], consts["a1"], consts["b1"],
      consts["a2"], consts["b2"], consts["mask"])

    out = out2d.reshape(batch, h_out, w_out, cout)
    return jnp.transpose(out, (0, 3, 1, 2))            # NHWC -> NCHW


# ---------------------------------------------------------------------------
# Pure-JAX reference (independent of the kernel) for correctness check
# ---------------------------------------------------------------------------
def _bilinear_upsample_ref(x, out_h, out_w):
    """x: (N, H, W, C) -> (N, out_h, out_w, C), align_corners=True."""
    N, H, W, C = x.shape
    ys = jnp.arange(out_h, dtype=jnp.float32) * ((H - 1) / (out_h - 1))
    xs = jnp.arange(out_w, dtype=jnp.float32) * ((W - 1) / (out_w - 1))
    y0 = jnp.floor(ys).astype(jnp.int32)
    x0 = jnp.floor(xs).astype(jnp.int32)
    y1 = jnp.minimum(y0 + 1, H - 1)
    x1 = jnp.minimum(x0 + 1, W - 1)
    wy = (ys - y0.astype(jnp.float32))[None, :, None, None]
    wx = (xs - x0.astype(jnp.float32))[None, None, :, None]
    r0 = jnp.take(x, y0, axis=1)
    r1 = jnp.take(x, y1, axis=1)
    rows = r0 * (1.0 - wy) + r1 * wy
    c0 = jnp.take(rows, x0, axis=2)
    c1 = jnp.take(rows, x1, axis=2)
    return c0 * (1.0 - wx) + c1 * wx


def decoder_reference(x_nchw, params):
    x = jnp.transpose(x_nchw, (0, 2, 3, 1))
    N, H, W, C = x.shape
    x = _bilinear_upsample_ref(x, 2 * H, 2 * W)

    def conv_bn_relu(x, w, gamma, beta, mean, var, eps=1e-5):
        y = jax.lax.conv_general_dilated(
            x, w, window_strides=(1, 1), padding=((1, 1), (1, 1)),
            dimension_numbers=("NHWC", "HWIO", "NHWC"))
        s = gamma / jnp.sqrt(var + eps)
        b = beta - mean * s
        return jnp.maximum(y * s + b, 0.0)

    x = conv_bn_relu(x, params["w1"], params["bn1_gamma"], params["bn1_beta"],
                     params["bn1_mean"], params["bn1_var"])
    x = conv_bn_relu(x, params["w2"], params["bn2_gamma"], params["bn2_beta"],
                     params["bn2_mean"], params["bn2_var"])
    return jnp.transpose(x, (0, 3, 1, 2))


# ---------------------------------------------------------------------------
# Main
# ---------------------------------------------------------------------------
if __name__ == "__main__":
    # Decoder(in_channels=4, channels=8, out_channels=8); input 2x4x16x16 -> out 2x8x32x32
    N, Cin, Cmid, Cout = 2, 4, 8, 8
    Hin = Win = 16

    key = jax.random.PRNGKey(0)
    ks = jax.random.split(key, 10)

    x = jax.random.normal(ks[0], (N, Cin, Hin, Win), jnp.float32)

    params = {
        # conv weights in HWIO layout (torch OIHW -> HWIO)
        "w1": jax.random.normal(ks[1], (3, 3, Cin, Cmid), jnp.float32) * 0.1,
        "w2": jax.random.normal(ks[2], (3, 3, Cmid, Cout), jnp.float32) * 0.1,
        # BatchNorm eval-mode running statistics (deterministic)
        "bn1_gamma": 1.0 + 0.1 * jax.random.normal(ks[3], (Cmid,), jnp.float32),
        "bn1_beta":  0.1 * jax.random.normal(ks[4], (Cmid,), jnp.float32),
        "bn1_mean":  0.1 * jax.random.normal(ks[5], (Cmid,), jnp.float32),
        "bn1_var":   jnp.abs(jax.random.normal(ks[6], (Cmid,), jnp.float32)) + 0.5,
        "bn2_gamma": 1.0 + 0.1 * jax.random.normal(ks[7], (Cout,), jnp.float32),
        "bn2_beta":  0.1 * jax.random.normal(ks[8], (Cout,), jnp.float32),
        "bn2_mean":  jnp.zeros((Cout,), jnp.float32),
        "bn2_var":   jnp.abs(jax.random.normal(ks[9], (Cout,), jnp.float32)) + 0.5,
    }

    # One-time prep (weight folding, band/upsample matrices, bf16 casts) outside jit.
    consts = precompute_decoder_constants(params, N, Hin, Win, up_sample=True)
    consts = jax.tree_util.tree_map(
        lambda a: jax.block_until_ready(a) if isinstance(a, jax.Array) else a, consts)

    fwd = jax.jit(lambda xx: decoder_forward(xx, consts))
    ref_fn = jax.jit(lambda xx: decoder_reference(xx, params))

    out = jax.block_until_ready(fwd(x))
    ref = jax.block_until_ready(ref_fn(x))

    assert out.shape == (N, Cout, 2 * Hin, 2 * Win), out.shape
    max_err = float(jnp.max(jnp.abs(out - ref)))
    # bf16 MXU operands (f32 accumulation) -> relaxed tolerance vs. the f32 reference.
    assert jnp.allclose(out, ref, atol=3e-2, rtol=3e-2), max_err

    print("KERNEL_OK")
</pallas_src>

<mosaic_0001>
module attributes {stable_mosaic.version = 11 : i64} {
  func.func @_decoder_fused_kernel(%arg0: i32, %arg1: memref<32x64xf32, #tpu.memory_space<vmem>>, %arg2: memref<68x32xf32, #tpu.memory_space<vmem>>, %arg3: memref<3x64x256xbf16, #tpu.memory_space<vmem>>, %arg4: memref<1x256xf32, #tpu.memory_space<vmem>>, %arg5: memref<3x256x256xbf16, #tpu.memory_space<vmem>>, %arg6: memref<1x256xf32, #tpu.memory_space<vmem>>, %arg7: memref<66x1xf32, #tpu.memory_space<vmem>>, %arg8: memref<2x32x256xf32, #tpu.memory_space<vmem>>, %arg9: memref<68x64xf32, #tpu.memory_space<vmem>>, %arg10: memref<68x256xf32, #tpu.memory_space<vmem>>) attributes {dimension_semantics = [#tpu.dimension_semantics<arbitrary>], iteration_bounds = array<i64: 1>, scalar_prefetch = 0 : i64, scratch_operands = 2 : i64, tpu.core_type = #tpu.core_type<tc>, window_params = [{pipeline_mode = #tpu.pipeline_mode<synchronous>, transform_indices = @transform_0, window_bounds = array<i64: 32, 64>}, {pipeline_mode = #tpu.pipeline_mode<synchronous>, transform_indices = @transform_1, window_bounds = array<i64: 68, 32>}, {pipeline_mode = #tpu.pipeline_mode<synchronous>, transform_indices = @transform_2, window_bounds = array<i64: 3, 64, 256>}, {pipeline_mode = #tpu.pipeline_mode<synchronous>, transform_indices = @transform_3, window_bounds = array<i64: 1, 256>}, {pipeline_mode = #tpu.pipeline_mode<synchronous>, transform_indices = @transform_4, window_bounds = array<i64: 3, 256, 256>}, {pipeline_mode = #tpu.pipeline_mode<synchronous>, transform_indices = @transform_5, window_bounds = array<i64: 1, 256>}, {pipeline_mode = #tpu.pipeline_mode<synchronous>, transform_indices = @transform_6, window_bounds = array<i64: 66, 1>}, {pipeline_mode = #tpu.pipeline_mode<synchronous>, transform_indices = @transform_7, window_bounds = array<i64: 2, 32, 256>}]} {
    %c0 = arith.constant 0 : index
    %c0_0 = arith.constant 0 : index
    %0 = vector.load %arg2[%c0, %c0_0] : memref<68x32xf32, #tpu.memory_space<vmem>>, vector<68x32xf32>
    %c0_1 = arith.constant 0 : index
    %c0_2 = arith.constant 0 : index
    %1 = vector.load %arg1[%c0_1, %c0_2] : memref<32x64xf32, #tpu.memory_space<vmem>>, vector<32x64xf32>
    %cst = arith.constant dense<0.000000e+00> : vector<68x64xf32>
    %2 = tpu.matmul %0, %1, %cst {dimension_numbers = #tpu.dot_dimension_numbers<[1], [0], [0], [1], [0, 0, 1, 1], [], []>} : vector<68x32xf32>, vector<32x64xf32>, vector<68x64xf32> -> vector<68x64xf32>
    %c0_3 = arith.constant 0 : index
    %c0_4 = arith.constant 0 : index
    %3 = vector.load %arg9[%c0_3, %c0_4] : memref<68x64xf32, #tpu.memory_space<vmem>>, vector<68x64xf32>
    tpu.vector_store %arg9[%c0_3, %c0_4], %2 {strides = array<i32>} : memref<68x64xf32, #tpu.memory_space<vmem>>, vector<68x64xf32>,
    %c0_5 = arith.constant 0 : index
    %c0_6 = arith.constant 0 : index
    %4 = vector.load %arg9[%c0_5, %c0_6] : memref<68x64xf32, #tpu.memory_space<vmem>>, vector<66x64xf32>
    %5 = arith.truncf %4 : vector<66x64xf32> to vector<66x64xbf16>
    %c0_7 = arith.constant 0 : index
    %c0_8 = arith.constant 0 : index
    %c0_9 = arith.constant 0 : index
    %6 = vector.load %arg3[%c0_7, %c0_8, %c0_9] : memref<3x64x256xbf16, #tpu.memory_space<vmem>>, vector<1x64x256xbf16>
    %7 = vector.shape_cast %6 : vector<1x64x256xbf16> to vector<64x256xbf16>
    %cst_10 = arith.constant dense<0.000000e+00> : vector<66x256xf32>
    %8 = tpu.matmul %5, %7, %cst_10 {dimension_numbers = #tpu.dot_dimension_numbers<[1], [0], [0], [1], [0, 0, 1, 1], [], []>} : vector<66x64xbf16>, vector<64x256xbf16>, vector<66x256xf32> -> vector<66x256xf32>
    %c1 = arith.constant 1 : index
    %c0_11 = arith.constant 0 : index
    %9 = vector.load %arg9[%c1, %c0_11] : memref<68x64xf32, #tpu.memory_space<vmem>>, vector<66x64xf32>
    %10 = arith.truncf %9 : vector<66x64xf32> to vector<66x64xbf16>
    %c1_12 = arith.constant 1 : index
    %c0_13 = arith.constant 0 : index
    %c0_14 = arith.constant 0 : index
    %11 = vector.load %arg3[%c1_12, %c0_13, %c0_14] : memref<3x64x256xbf16, #tpu.memory_space<vmem>>, vector<1x64x256xbf16>
    %12 = vector.shape_cast %11 : vector<1x64x256xbf16> to vector<64x256xbf16>
    %cst_15 = arith.constant dense<0.000000e+00> : vector<66x256xf32>
    %13 = tpu.matmul %10, %12, %cst_15 {dimension_numbers = #tpu.dot_dimension_numbers<[1], [0], [0], [1], [0, 0, 1, 1], [], []>} : vector<66x64xbf16>, vector<64x256xbf16>, vector<66x256xf32> -> vector<66x256xf32>
    %14 = arith.addf %8, %13 : vector<66x256xf32>
    %c2 = arith.constant 2 : index
    %c0_16 = arith.constant 0 : index
    %15 = vector.load %arg9[%c2, %c0_16] : memref<68x64xf32, #tpu.memory_space<vmem>>, vector<66x64xf32>
    %16 = arith.truncf %15 : vector<66x64xf32> to vector<66x64xbf16>
    %c2_17 = arith.constant 2 : index
    %c0_18 = arith.constant 0 : index
    %c0_19 = arith.constant 0 : index
    %17 = vector.load %arg3[%c2_17, %c0_18, %c0_19] : memref<3x64x256xbf16, #tpu.memory_space<vmem>>, vector<1x64x256xbf16>
    %18 = vector.shape_cast %17 : vector<1x64x256xbf16> to vector<64x256xbf16>
    %cst_20 = arith.constant dense<0.000000e+00> : vector<66x256xf32>
    %19 = tpu.matmul %16, %18, %cst_20 {dimension_numbers = #tpu.dot_dimension_numbers<[1], [0], [0], [1], [0, 0, 1, 1], [], []>} : vector<66x64xbf16>, vector<64x256xbf16>, vector<66x256xf32> -> vector<66x256xf32>
    %20 = arith.addf %14, %19 : vector<66x256xf32>
    %c0_21 = arith.constant 0 : index
    %c0_22 = arith.constant 0 : index
    %21 = vector.load %arg4[%c0_21, %c0_22] : memref<1x256xf32, #tpu.memory_space<vmem>>, vector<1x256xf32>
    %22 = vector.broadcast %21 : vector<1x256xf32> to vector<66x256xf32>
    %23 = arith.addf %20, %22 : vector<66x256xf32>
    %cst_23 = arith.constant 0.000000e+00 : f32
    %24 = vector.broadcast %cst_23 : f32 to vector<66x256xf32>
    %25 = arith.maximumf %23, %24 : vector<66x256xf32>
    %c0_24 = arith.constant 0 : index
    %c0_25 = arith.constant 0 : index
    %26 = vector.load %arg7[%c0_24, %c0_25] : memref<66x1xf32, #tpu.memory_space<vmem>>, vector<66x1xf32>
    %27 = vector.broadcast %26 : vector<66x1xf32> to vector<66x256xf32>
    %28 = arith.mulf %25, %27 : vector<66x256xf32>
    %cst_26 = arith.constant 0.000000e+00 : f32
    %29 = vector.broadcast %cst_26 : f32 to vector<1x256xf32>
    %c0_27 = arith.constant 0 : index
    %c0_28 = arith.constant 0 : index
    %30 = vector.load %arg10[%c0_27, %c0_28] : memref<68x256xf32, #tpu.memory_space<vmem>>, vector<1x256xf32>
    tpu.vector_store %arg10[%c0_27, %c0_28], %29 {strides = array<i32>} : memref<68x256xf32, #tpu.memory_space<vmem>>, vector<1x256xf32>,
    %c67 = arith.constant 67 : index
    %c0_29 = arith.constant 0 : index
    %31 = vector.load %arg10[%c67, %c0_29] : memref<68x256xf32, #tpu.memory_space<vmem>>, vector<1x256xf32>
    tpu.vector_store %arg10[%c67, %c0_29], %29 {strides = array<i32>} : memref<68x256xf32, #tpu.memory_space<vmem>>, vector<1x256xf32>,
    %c1_30 = arith.constant 1 : index
    %c0_31 = arith.constant 0 : index
    %32 = vector.load %arg10[%c1_30, %c0_31] : memref<68x256xf32, #tpu.memory_space<vmem>>, vector<66x256xf32>
    tpu.vector_store %arg10[%c1_30, %c0_31], %28 {strides = array<i32>} : memref<68x256xf32, #tpu.memory_space<vmem>>, vector<66x256xf32>,
    %c0_32 = arith.constant 0 : index
    %c0_33 = arith.constant 0 : index
    %33 = vector.load %arg10[%c0_32, %c0_33] : memref<68x256xf32, #tpu.memory_space<vmem>>, vector<66x256xf32>
    %34 = arith.truncf %33 : vector<66x256xf32> to vector<66x256xbf16>
    %c0_34 = arith.constant 0 : index
    %c0_35 = arith.constant 0 : index
    %c0_36 = arith.constant 0 : index
    %35 = vector.load %arg5[%c0_34, %c0_35, %c0_36] : memref<3x256x256xbf16, #tpu.memory_space<vmem>>, vector<1x256x256xbf16>
    %36 = vector.shape_cast %35 : vector<1x256x256xbf16> to vector<256x256xbf16>
    %cst_37 = arith.constant dense<0.000000e+00> : vector<66x256xf32>
    %37 = tpu.matmul %34, %36, %cst_37 {dimension_numbers = #tpu.dot_dimension_numbers<[1], [0], [0], [1], [0, 0, 1, 1], [], []>} : vector<66x256xbf16>, vector<256x256xbf16>, vector<66x256xf32> -> vector<66x256xf32>
    %c1_38 = arith.constant 1 : index
    %c0_39 = arith.constant 0 : index
    %38 = vector.load %arg10[%c1_38, %c0_39] : memref<68x256xf32, #tpu.memory_space<vmem>>, vector<66x256xf32>
    %39 = arith.truncf %38 : vector<66x256xf32> to vector<66x256xbf16>
    %c1_40 = arith.constant 1 : index
    %c0_41 = arith.constant 0 : index
    %c0_42 = arith.constant 0 : index
    %40 = vector.load %arg5[%c1_40, %c0_41, %c0_42] : memref<3x256x256xbf16, #tpu.memory_space<vmem>>, vector<1x256x256xbf16>
    %41 = vector.shape_cast %40 : vector<1x256x256xbf16> to vector<256x256xbf16>
    %cst_43 = arith.constant dense<0.000000e+00> : vector<66x256xf32>
    %42 = tpu.matmul %39, %41, %cst_43 {dimension_numbers = #tpu.dot_dimension_numbers<[1], [0], [0], [1], [0, 0, 1, 1], [], []>} : vector<66x256xbf16>, vector<256x256xbf16>, vector<66x256xf32> -> vector<66x256xf32>
    %43 = arith.addf %37, %42 : vector<66x256xf32>
    %c2_44 = arith.constant 2 : index
    %c0_45 = arith.constant 0 : index
    %44 = vector.load %arg10[%c2_44, %c0_45] : memref<68x256xf32, #tpu.memory_space<vmem>>, vector<66x256xf32>
    %45 = arith.truncf %44 : vector<66x256xf32> to vector<66x256xbf16>
    %c2_46 = arith.constant 2 : index
    %c0_47 = arith.constant 0 : index
    %c0_48 = arith.constant 0 : index
    %46 = vector.load %arg5[%c2_46, %c0_47, %c0_48] : memref<3x256x256xbf16, #tpu.memory_space<vmem>>, vector<1x256x256xbf16>
    %47 = vector.shape_cast %46 : vector<1x256x256xbf16> to vector<256x256xbf16>
    %cst_49 = arith.constant dense<0.000000e+00> : vector<66x256xf32>
    %48 = tpu.matmul %45, %47, %cst_49 {dimension_numbers = #tpu.dot_dimension_numbers<[1], [0], [0], [1], [0, 0, 1, 1], [], []>} : vector<66x256xbf16>, vector<256x256xbf16>, vector<66x256xf32> -> vector<66x256xf32>
    %49 = arith.addf %43, %48 : vector<66x256xf32>
    %c0_50 = arith.constant 0 : index
    %c0_51 = arith.constant 0 : index
    %50 = vector.load %arg6[%c0_50, %c0_51] : memref<1x256xf32, #tpu.memory_space<vmem>>, vector<1x256xf32>
    %51 = vector.broadcast %50 : vector<1x256xf32> to vector<66x256xf32>
    %52 = arith.addf %49, %51 : vector<66x256xf32>
    %cst_52 = arith.constant 0.000000e+00 : f32
    %53 = vector.broadcast %cst_52 : f32 to vector<66x256xf32>
    %54 = arith.maximumf %52, %53 : vector<66x256xf32>
    %55 = vector.extract_strided_slice %54 {offsets = [0, 0], sizes = [32, 256], strides = [1, 1]} : vector<66x256xf32> to vector<32x256xf32>
    %c0_53 = arith.constant 0 : index
    %c0_54 = arith.constant 0 : index
    %c0_55 = arith.constant 0 : index
    %56 = vector.load %arg8[%c0_53, %c0_54, %c0_55] : memref<2x32x256xf32, #tpu.memory_space<vmem>>, vector<1x32x256xf32>
    %57 = vector.shape_cast %56 : vector<1x32x256xf32> to vector<32x256xf32>
    %58 = vector.shape_cast %55 : vector<32x256xf32> to vector<1x32x256xf32>
    tpu.vector_store %arg8[%c0_53, %c0_54, %c0_55], %58 {strides = array<i32>} : memref<2x32x256xf32, #tpu.memory_space<vmem>>, vector<1x32x256xf32>,
    %59 = vector.extract_strided_slice %54 {offsets = [34, 0], sizes = [32, 256], strides = [1, 1]} : vector<66x256xf32> to vector<32x256xf32>
    %c1_56 = arith.constant 1 : index
    %c0_57 = arith.constant 0 : index
    %c0_58 = arith.constant 0 : index
    %60 = vector.load %arg8[%c1_56, %c0_57, %c0_58] : memref<2x32x256xf32, #tpu.memory_space<vmem>>, vector<1x32x256xf32>
    %61 = vector.shape_cast %60 : vector<1x32x256xf32> to vector<32x256xf32>
    %62 = vector.shape_cast %59 : vector<32x256xf32> to vector<1x32x256xf32>
    tpu.vector_store %arg8[%c1_56, %c0_57, %c0_58], %62 {strides = array<i32>} : memref<2x32x256xf32, #tpu.memory_space<vmem>>, vector<1x32x256xf32>,
    return
  }
  func.func @transform_0(%arg0: i32) -> (i32, i32) {
    %c0_i32 = arith.constant 0 : i32
    %c0_i32_0 = arith.constant 0 : i32
    %c0_i32_1 = arith.constant 0 : i32
    return %c0_i32, %c0_i32_0 : i32, i32
  }
  func.func @transform_1(%arg0: i32) -> (i32, i32) {
    %c0_i32 = arith.constant 0 : i32
    %c0_i32_0 = arith.constant 0 : i32
    %c0_i32_1 = arith.constant 0 : i32
    return %c0_i32, %c0_i32_0 : i32, i32
  }
  func.func @transform_2(%arg0: i32) -> (i32, i32, i32) {
    %c0_i32 = arith.constant 0 : i32
    %c0_i32_0 = arith.constant 0 : i32
    %c0_i32_1 = arith.constant 0 : i32
    %c0_i32_2 = arith.constant 0 : i32
    return %c0_i32, %c0_i32_0, %c0_i32_1 : i32, i32, i32
  }
  func.func @transform_3(%arg0: i32) -> (i32, i32) {
    %c0_i32 = arith.constant 0 : i32
    %c0_i32_0 = arith.constant 0 : i32
    %c0_i32_1 = arith.constant 0 : i32
    return %c0_i32, %c0_i32_0 : i32, i32
  }
  func.func @transform_4(%arg0: i32) -> (i32, i32, i32) {
    %c0_i32 = arith.constant 0 : i32
    %c0_i32_0 = arith.constant 0 : i32
    %c0_i32_1 = arith.constant 0 : i32
    %c0_i32_2 = arith.constant 0 : i32
    return %c0_i32, %c0_i32_0, %c0_i32_1 : i32, i32, i32
  }
  func.func @transform_5(%arg0: i32) -> (i32, i32) {
    %c0_i32 = arith.constant 0 : i32
    %c0_i32_0 = arith.constant 0 : i32
    %c0_i32_1 = arith.constant 0 : i32
    return %c0_i32, %c0_i32_0 : i32, i32
  }
  func.func @transform_6(%arg0: i32) -> (i32, i32) {
    %c0_i32 = arith.constant 0 : i32
    %c0_i32_0 = arith.constant 0 : i32
    %c0_i32_1 = arith.constant 0 : i32
    return %c0_i32, %c0_i32_0 : i32, i32
  }
  func.func @transform_7(%arg0: i32) -> (i32, i32, i32) {
    %c0_i32 = arith.constant 0 : i32
    %c0_i32_0 = arith.constant 0 : i32
    %c0_i32_1 = arith.constant 0 : i32
    %c0_i32_2 = arith.constant 0 : i32
    return %c0_i32, %c0_i32_0, %c0_i32_1 : i32, i32, i32
  }
}

</mosaic_0001>

<bundles_post_ra>
// kernel: _lambda_.1
= control target key start
LH: loop header
LB: loop body
LE: loop exit
PB: predicated region body
PF: predicated region fallthrough
CT: control target
= control target key end

     0   :  { %12 = vsyncpa [#allocation5], 0  ;;  %s2455_s24 = smov [#allocation4]   ;;  %s3088_s0 = inlined_call_operand.vmem [shape: f32[32,64], index: 0, kind: input, shape index: {}]   ;;  %s3089_s1 = inlined_call_operand.vmem [shape: f32[68,32], index: 1, kind: input, shape index: {}]   ;;  %s3090_s2 = inlined_call_operand.vmem [shape: bf16[3,64,256], index: 2, kind: input, shape index: {}]   ;;  %s3091_s3 = inlined_call_operand.vmem [shape: f32[1,256], index: 3, kind: input, shape index: {}]   ;;  %s3092_s4 = inlined_call_operand.hbm [shape: bf16[3,256,256], index: 4, kind: input, shape index: {}]   ;;  %s3093_s5 = inlined_call_operand.vmem [shape: f32[1,256], index: 5, kind: input, shape index: {}]   ;;  %s3094_s6 = inlined_call_operand.vmem [shape: f32[66,1], index: 6, kind: input, shape index: {}]   ;;  %s3095_s7 = inlined_call_operand.vmem [shape: f32[2,32,256], index: 7, kind: output, shape index: {}]  }
   0x1   :  { %s26_s25 = sshll.u32 %s2455_s24, 4  ;;  %s27_s25 = int_to_ptr.vmem [resolvable:$true] %s26_s25 }
   0x2   :  { %s2441_s26 = scalar_lea.vmem %s27_s25, 12288  ;;  %p2446_p1 = scmp.lt.s32.totalorder %s27_s25, %s27_s25 }
   0x3   :  { %p2442_p0 = scmp.ne.s32.totalorder %s27_s25, %s2441_s26  ;;  %p2447_p2 = scmp.lt.s32.totalorder %s2441_s26, %s2441_s26 }
   0x5   :  { %p2448_p3 = por %p2447_p2, %p2446_p1 }
   0x7   :  { %p2449_p4 = pnand %p2448_p3, %p2442_p0 }
   0x9   :  { %2452 = shalt.err (!%p2449_p4)
}
   0xa   :  { %s2456_s27 = smov 128   ;;  %s2457_s28 = smov 8  }
   0xb   :  { %32 = dma.hbm_to_vmem [thread:$0]  %s3092_s4, 12288, %s27_s25, [#allocation5], %s2456_s27, %s2456_s27, %s2457_s28  }
   0xc   :  { %2453 = dma.done.wait [#allocation5], 12288  }
   0xd   :  { %2454 = vsyncadd [#allocation5], 4294955008  ;;  %v2458_v0 = vmov 0.0   ;;  %vm2459_vm0 = vmmov 0   ;;  %v53_v1 = vld [vmem:[%s3088_s0 + $0x18] sm:$0xff]  ;;  %v52_v2 = vld [vmem:[%s3088_s0 + $0x10] sm:$0xff] }
   0xe   :  { %2214 = vmatprep.subr.mxu1 %v2458_v0  ;;  %2222 = vmatprep.mubr.msk.f32.mxu1 %vm2459_vm0, %v2458_v0  ;;  %v51_v3 = vld [vmem:[%s3088_s0 + $0x8] sm:$0xff]  ;;  %v50_v4 = vld [vmem:[%s3088_s0] sm:$0xff]  ;;  %vm54_vm1 = vcmask 261120   ;;  %v2257_v6 = vld [vmem:[%s3090_s2 + $0x70] ss:$8 sps:$4 sm:$0xff]   ;;  %v2460_v38 = vmov 0  }
   0xf   :  { %2215 = vmatpush3.msra.mxu1 %v53_v1  ;;  %v41_v5 = vld [vmem:[%s3089_s1] sm:$0xff]  ;;  %v2259_v7 = vld [vmem:[%s3090_s2 + $0x74] ss:$8 sps:$4 sm:$0xff]   ;;  %v42_v9 = vld [vmem:[%s3089_s1 + $0x8] sm:$0xff]  ;;  %471 = vmatprep.mubr.bf16.mxu0 %v2460_v38  ;;  %vm192_vm2 = vcmask 523264   ;;  %vm201_vm3 = vcmask 519168  }
  0x10   :  { %2216 = vmatprep.subr.mxu1 %v2458_v0  ;;  %v2262_v8 = vld [vmem:[%s3090_s2 + $0x64] ss:$8 sps:$4 sm:$0xff]   ;;  %v2260_v10 = vld [vmem:[%s3090_s2 + $0x60] ss:$8 sps:$4 sm:$0xff]   ;;  %v2263_v11 = vld [vmem:[%s3090_s2 + $0x34] ss:$8 sps:$4 sm:$0xff]   ;;  %2255 = vset.pattern.permute.xlu0 %v2460_v38 }
  0x11   :  { %2217 = vmatpush3.msra.mxu1 %v52_v2  ;;  %447 = vmatprep.subr.bf16.mxu0 %v2263_v11  ;;  %v43_v12 = vld [vmem:[%s3089_s1 + $0x10] sm:$0xff]  ;;  %v44_v13 = vld [vmem:[%s3089_s1 + $0x18] sm:$0xff]  ;;  %v45_v14 = vld [vmem:[%s3089_s1 + $0x20] sm:$0xff]  ;;  %vm844_vm5 = vcmask 1040384   ;;  %vm1016_vm6 = vsmask.f32 7424 }
  0x12   :  { %2218 = vmatprep.subr.mxu1 %v2458_v0  ;;  %v46_v15 = vld [vmem:[%s3089_s1 + $0x28] sm:$0xff]  ;;  %v47_v16 = vld [vmem:[%s3089_s1 + $0x30] sm:$0xff]  ;;  %v48_v17 = vld [vmem:[%s3089_s1 + $0x38] sm:$0xff]  ;;  %2256 = vset.pattern.permute.xlu1 %v2460_v38  ;;  %vm1638_vm7 = vcmask 1046528   ;;  %vm1992_vm8 = vcmask 1045504  }
  0x13   :  { %2219 = vmatpush3.msra.mxu1 %v51_v3  ;;  %v49_v18 = vld [vmem:[%s3089_s1 + $0x40] sm:$0xf]  ;;  %v223_v19 = vld [vmem:[%s3090_s2 + $0x30] sm:$0xff]  ;;  %v224_v20 = vld [vmem:[%s3090_s2 + $0x38] sm:$0xff] }
  0x14   :  { %2220 = vmatprep.subr.mxu1 %v2458_v0  ;;  %v2069_v21 = vcombine.low %v223_v19, %v224_v20  ;;  %v2265_v22 = vld [vmem:[%s3090_s2 + $0x50] ss:$8 sps:$4 sm:$0xff]   ;;  %v2267_v23 = vld [vmem:[%s3090_s2 + $0x54] ss:$8 sps:$4 sm:$0xff]   ;;  %v221_v24 = vld [vmem:[%s3090_s2 + $0x20] sm:$0xff] }
  0x15   :  { %2221 = vmatpush3.msra.mxu1 %v50_v4  ;;  %v222_v25 = vld [vmem:[%s3090_s2 + $0x28] sm:$0xff]  ;;  %v219_v28 = vld [vmem:[%s3090_s2 + $0x10] sm:$0xff]  ;;  %v220_v29 = vld [vmem:[%s3090_s2 + $0x18] sm:$0xff] }
  0x16   :  { %2223 = vmatmul.mubr.msk.f32.vlgmr.msra.gmra.mxu1 %vm54_vm1, %v41_v5  ;;  %311 = vmatprep.subr.bf16.mxu1 %v2259_v7  ;;  %v2268_v26 = vld [vmem:[%s3090_s2 + $0x24] ss:$8 sps:$4 sm:$0xff]   ;;  %v2067_v27 = vcombine.low %v221_v24, %v222_v25  ;;  %v2270_v30 = vld [vmem:[%s3090_s2 + $0x14] ss:$8 sps:$4 sm:$0xff]   ;;  %v2065_v31 = vcombine.low %v219_v28, %v220_v29  ;;  %v2272_v32 = vld [vmem:[%s3090_s2 + $0x40] ss:$8 sps:$4 sm:$0xff]  }
  0x17   :  { %2225 = vmatprep.mubr.msk.f32.mxu1 %vm2459_vm0, %v2458_v0  ;;  %312 = vmatpush1.bf16.msra.mxu1 %v2257_v6  ;;  %v2274_v33 = vld [vmem:[%s3090_s2 + $0x44] ss:$8 sps:$4 sm:$0xff]   ;;  %v2279_v39 = vld [vmem:[%s3090_s2 + $0xb4] ss:$8 sps:$4 sm:$0xff]   ;;  %v753_v48 = vld [vmem:[%s3094_s6 + $0x40] sm:$0x3] }
  0x18   :  { %313 = vmatprep.subr.bf16.mxu1 %v2262_v8  ;;  %448 = vmatpush1.bf16.msra.mxu0 %v2069_v21  ;;  %v217_v34 = vld [vmem:[%s3090_s2] sm:$0xff]  ;;  %v218_v35 = vld [vmem:[%s3090_s2 + $0x8] sm:$0xff]  ;;  %v747_v41 = vld [vmem:[%s3094_s6 + $0x10] sm:$0xff] }
  0x19   :  { %449 = vmatprep.subr.bf16.mxu0 %v2268_v26  ;;  %v2275_v36 = vld [vmem:[%s3090_s2 + $0x4] ss:$8 sps:$4 sm:$0xff]   ;;  %v2063_v37 = vcombine.low %v217_v34, %v218_v35  ;;  %766 = vperm.xlu1 %2256, %v747_v41   ;;  %v748_v43 = vld [vmem:[%s3094_s6 + $0x18] sm:$0xff]  ;;  %v751_v46 = vld [vmem:[%s3094_s6 + $0x30] sm:$0xff] }
  0x1a   :  { %2226 = vmatmul.mubr.msk.f32.gmra.mxu1 %vm54_vm1, %v42_v9  ;;  %v745_v40 = vld [vmem:[%s3094_s6] sm:$0xff]  ;;  %v746_v42 = vld [vmem:[%s3094_s6 + $0x8] sm:$0xff]  ;;  %v752_v47 = vld [vmem:[%s3094_s6 + $0x38] sm:$0xff] }
  0x1b   :  { %2228 = vmatprep.mubr.msk.f32.mxu1 %vm2459_vm0, %v2458_v0  ;;  %314 = vmatpush1.bf16.msra.mxu1 %v2260_v10  ;;  %v749_v44 = vld [vmem:[%s3094_s6 + $0x20] sm:$0xff]  ;;  %v750_v45 = vld [vmem:[%s3094_s6 + $0x28] sm:$0xff]  ;;  %v2277_v61 = vld [vmem:[%s3090_s2 + $0xb0] ss:$8 sps:$4 sm:$0xff]  }
  0x1c   :  { %315 = vmatprep.subr.bf16.mxu1 %v2267_v23  ;;  %450 = vmatpush1.bf16.msra.mxu0 %v2067_v27  ;;  %v2282_v2 = vld [vmem:[%s3090_s2 + $0xa4] ss:$8 sps:$4 sm:$0xff]   ;;  %v2280_v7 = vld [vmem:[%s3090_s2 + $0xa0] ss:$8 sps:$4 sm:$0xff]   ;;  %v2285_v9 = vld [vmem:[%s3090_s2 + $0x94] ss:$8 sps:$4 sm:$0xff]  }
  0x1d   :  { %451 = vmatprep.subr.bf16.mxu0 %v2270_v30  ;;  %756 = vperm.xlu0 %2255, %v745_v40   ;;  %v2286_v21 = vld [vmem:[%s3090_s2 + $0x80] ss:$8 sps:$4 sm:$0xff]  }
  0x1e   :  { %2229 = vmatmul.mubr.msk.f32.gmra.mxu1 %vm54_vm1, %v43_v12  ;;  %771 = vperm.xlu1 %2256, %v748_v43  }
  0x1f   :  { %2231 = vmatprep.mubr.msk.f32.mxu1 %vm2459_vm0, %v2458_v0  ;;  %316 = vmatpush1.bf16.msra.mxu1 %v2265_v22 }
  0x20   :  { %452 = vmatpush1.bf16.msra.mxu0 %v2065_v31  ;;  %317 = vmatprep.subr.bf16.mxu1 %v2274_v33 }
  0x21   :  { %453 = vmatprep.subr.bf16.mxu0 %v2275_v36  ;;  %761 = vperm.xlu0 %2255, %v746_v42  }
  0x22   :  { %2232 = vmatmul.mubr.msk.f32.gmra.mxu1 %vm54_vm1, %v44_v13  ;;  %781 = vperm.xlu1 %2256, %v750_v45  }
  0x23   :  { %2234 = vmatprep.mubr.msk.f32.mxu1 %vm2459_vm0, %v2458_v0  ;;  %318 = vmatpush1.bf16.msra.mxu1 %v2272_v32 }
  0x24   :  { %454 = vmatpush1.bf16.msra.mxu0 %v2063_v37  ;;  %606 = vmatprep.subr.bf16.mxu1 %v2279_v39 }
  0x25   :  { %776 = vperm.xlu0 %2255, %v749_v44  }
  0x26   :  { %2235 = vmatmul.mubr.msk.f32.gmra.mxu1 %vm54_vm1, %v45_v14  ;;  %791 = vperm.xlu1 %2256, %v752_v47   ;;  %v2283_v14 = vld [vmem:[%s3090_s2 + $0x90] ss:$8 sps:$4 sm:$0xff]  }
  0x27   :  { %2237 = vmatprep.mubr.msk.f32.mxu1 %vm2459_vm0, %v2458_v0 }
  0x29   :  { %786 = vperm.xlu0 %2255, %v751_v46  }
  0x2a   :  { %2238 = vmatmul.mubr.msk.f32.gmra.mxu1 %vm54_vm1, %v46_v15 }
  0x2b   :  { %2240 = vmatprep.mubr.msk.f32.mxu1 %vm2459_vm0, %v2458_v0 }
  0x2d   :  { %796 = vperm.xlu0 %2255, %v753_v48  }
  0x2e   :  { %2241 = vmatmul.mubr.msk.f32.gmra.mxu1 %vm54_vm1, %v47_v16  ;;  %v2288_v16 = vld [vmem:[%s3090_s2 + $0x84] ss:$8 sps:$4 sm:$0xff]  }
  0x2f   :  { %2243 = vmatprep.mubr.msk.f32.mxu1 %vm2459_vm0, %v2458_v0 }
  0x32   :  { %2244 = vmatmul.mubr.msk.f32.gmra.mxu1 %vm54_vm1, %v48_v17 }
  0x33   :  { %2246 = vmatprep.mubr.msk.f32.mxu1 %vm2459_vm0, %v2458_v0 }
  0x36   :  { %2247 = vmatmul.mubr.msk.f32.gmra.mxu1 %vm54_vm1, %v49_v18 }
  0x37   :  { %335 = vmatprep.mubr.bf16.mxu1 %v2460_v38 }
  0xd6   :  { %v148_v49 = vpop.f32.mrf.mxu1 }
  0xd7   :  { %193 = vst.msk [vmem:[#allocation2] sm:$0xff] %vm192_vm2, %v148_v49 }
  0xd8   :  { %v2224_v50 = vpop.f32.mrf.mxu1 }
  0xda   :  { %v153_v51 = vpop.f32.mrf.mxu1 }
  0xdb   :  { %194 = vst.msk [vmem:[#allocation2 + $0x8] sm:$0xff] %vm192_vm2, %v153_v51 }
  0xdc   :  { %v2227_v52 = vpop.f32.mrf.mxu1 }
  0xdd   :  { %v2291_v52 = vld [vmem:[#allocation4 + $0x74] ss:$8 sps:$4 sm:$0xff]  }
  0xde   :  { %v158_v53 = vpop.f32.mrf.mxu1  ;;  %v203_v56 = vld [vmem:[#allocation2] sm:$0xff] }
  0xdf   :  { %195 = vst.msk [vmem:[#allocation2 + $0x10] sm:$0xff] %vm192_vm2, %v158_v53  ;;  %v2289_v53 = vld [vmem:[#allocation4 + $0x70] ss:$8 sps:$4 sm:$0xff]  }
  0xe0   :  { %v2230_v54 = vpop.f32.mrf.mxu1 }
  0xe2   :  { %v163_v55 = vpop.f32.mrf.mxu1  ;;  %v204_v57 = vld [vmem:[#allocation2 + $0x8] sm:$0xff] }
  0xe3   :  { %196 = vst.msk [vmem:[#allocation2 + $0x18] sm:$0xff] %vm192_vm2, %v163_v55  ;;  %v212_v58 = vpack.c.bf16 %v204_v57, %v203_v56  ;;  %v225_v62 = vld [vmem:[#allocation2 + $0x1] sm:$0xff] }
  0xe4   :  { %v2233_v59 = vpop.f32.mrf.mxu1  ;;  %v520_v41 = vld [vmem:[#allocation2 + $0x2] sm:$0xff] }
  0xe5   :  { %2071 = vmatmul.mubr.msk.bf16.vlgmr.msra.gmra.mxu0 %vm192_vm2, %v212_v58  ;;  %v2294_v55 = vld [vmem:[#allocation4 + $0x64] ss:$8 sps:$4 sm:$0xff]   ;;  %v2292_v56 = vld [vmem:[#allocation4 + $0x60] ss:$8 sps:$4 sm:$0xff]   ;;  %v2297_v58 = vld [vmem:[#allocation4 + $0x54] ss:$8 sps:$4 sm:$0xff]  }
  0xe6   :  { %v168_v60 = vpop.f32.mrf.mxu1  ;;  %v226_v63 = vld [vmem:[#allocation2 + $0x9] sm:$0xff]  ;;  %481 = vmatprep.mubr.bf16.mxu0 %v2460_v38 }
  0xe7   :  { %197 = vst.msk [vmem:[#allocation2 + $0x20] sm:$0xff] %vm192_vm2, %v168_v60  ;;  %v234_v1 = vpack.c.bf16 %v226_v63, %v225_v62  ;;  %v205_v5 = vld [vmem:[#allocation2 + $0x10] sm:$0xff]  ;;  %v2303_v62 = vld [vmem:[#allocation4 + $0x44] ss:$8 sps:$4 sm:$0xff]  }
  0xe8   :  { %v2236_v3 = vpop.f32.mrf.mxu1  ;;  %v521_v40 = vld [vmem:[#allocation2 + $0xa] sm:$0xff]  ;;  %v2306_v63 = vld [vmem:[#allocation4 + $0x164] ss:$8 sps:$4 sm:$0xff]  }
  0xe9   :  { %2058 = vmatmul.mubr.msk.bf16.vlgmr.msra.gmra.mxu1 %vm192_vm2, %v234_v1  ;;  %v529_v42 = vpack.c.bf16 %v521_v40, %v520_v41  ;;  %v2295_v59 = vld [vmem:[#allocation4 + $0x50] ss:$8 sps:$4 sm:$0xff]   ;;  %v2300_v60 = vld [vmem:[#allocation4 + $0x174] ss:$8 sps:$4 sm:$0xff]   ;;  %v2304_v1 = vld [vmem:[#allocation4 + $0x160] ss:$8 sps:$4 sm:$0xff]  }
  0xea   :  { %607 = vmatpush1.bf16.msra.mxu1 %v2277_v61  ;;  %v173_v4 = vpop.f32.mrf.mxu1  ;;  %v206_v6 = vld [vmem:[#allocation2 + $0x18] sm:$0xff]  ;;  %345 = vmatprep.mubr.bf16.mxu1 %v2460_v38  ;;  %v2298_v61 = vld [vmem:[#allocation4 + $0x170] ss:$8 sps:$4 sm:$0xff]  }
  0xeb   :  { %198 = vst.msk [vmem:[#allocation2 + $0x28] sm:$0xff] %vm192_vm2, %v173_v4  ;;  %v213_v8 = vpack.c.bf16 %v206_v6, %v205_v5  ;;  %608 = vmatprep.subr.bf16.mxu1 %v2282_v2  ;;  %v227_v12 = vld [vmem:[#allocation2 + $0x11] sm:$0xff]  ;;  %1265 = vmatprep.subr.bf16.mxu0 %v2300_v60  ;;  %v2315_v6 = vld [vmem:[#allocation4 + $0x24] ss:$8 sps:$4 sm:$0xff]  }
  0xec   :  { %v2239_v10 = vpop.f32.mrf.mxu1  ;;  %v522_v44 = vld [vmem:[#allocation2 + $0x12] sm:$0xff]  ;;  %1266 = vmatpush1.bf16.msra.mxu0 %v2298_v61  ;;  %v2363_v40 = vld [vmem:[#allocation4 + $0xa4] ss:$8 sps:$4 sm:$0xff]  }
  0xed   :  { %2072 = vmatmul.mubr.msk.bf16.gmra.mxu0 %vm192_vm2, %v213_v8  ;;  %1267 = vmatprep.subr.bf16.mxu0 %v2306_v63  ;;  %v2309_v2 = vld [vmem:[#allocation4 + $0x34] ss:$8 sps:$4 sm:$0xff]   ;;  %v2307_v3 = vld [vmem:[#allocation4 + $0x30] ss:$8 sps:$4 sm:$0xff]   ;;  %v2318_v8 = vld [vmem:[#allocation4 + $0x144] ss:$8 sps:$4 sm:$0xff]  }
  0xee   :  { %v178_v11 = vpop.f32.mrf.mxu1  ;;  %v228_v13 = vld [vmem:[#allocation2 + $0x19] sm:$0xff]  ;;  %609 = vmatpush1.bf16.msra.mxu1 %v2280_v7  ;;  %491 = vmatprep.mubr.bf16.mxu0 %v2460_v38  ;;  %v2312_v4 = vld [vmem:[#allocation4 + $0x154] ss:$8 sps:$4 sm:$0xff]   ;;  %v2310_v5 = vld [vmem:[#allocation4 + $0x150] ss:$8 sps:$4 sm:$0xff]  }
  0xef   :  { %199 = vst.msk [vmem:[#allocation2 + $0x30] sm:$0xff] %vm192_vm2, %v178_v11  ;;  %v235_v15 = vpack.c.bf16 %v228_v13, %v227_v12  ;;  %610 = vmatprep.subr.bf16.mxu1 %v2285_v9  ;;  %v207_v19 = vld [vmem:[#allocation2 + $0x20] sm:$0xff]  ;;  %v2321_v10 = vld [vmem:[#allocation4 + $0x14] ss:$8 sps:$4 sm:$0xff]   ;;  %v2319_v11 = vld [vmem:[#allocation4 + $0x10] ss:$8 sps:$4 sm:$0xff]  }
  0xf0   :  { %v2242_v17 = vpop.f32.mrf.mxu1  ;;  %v523_v43 = vld [vmem:[#allocation2 + $0x1a] sm:$0xff]  ;;  %1268 = vmatpush1.bf16.msra.mxu0 %v2304_v1  ;;  %v2324_v12 = vld [vmem:[#allocation4 + $0x134] ss:$8 sps:$4 sm:$0xff]   ;;  %v2322_v13 = vld [vmem:[#allocation4 + $0x130] ss:$8 sps:$4 sm:$0xff]  }
  0xf1   :  { %2059 = vmatmul.mubr.msk.bf16.gmra.mxu1 %vm192_vm2, %v235_v15  ;;  %v530_v45 = vpack.c.bf16 %v523_v43, %v522_v44  ;;  %1269 = vmatprep.subr.bf16.mxu0 %v2312_v4  ;;  %v2313_v7 = vld [vmem:[#allocation4 + $0x20] ss:$8 sps:$4 sm:$0xff]   ;;  %v2369_v44 = vld [vmem:[#allocation4 + $0x94] ss:$8 sps:$4 sm:$0xff]  }
  0xf2   :  { %v183_v18 = vpop.f32.mrf.mxu1  ;;  %v208_v20 = vld [vmem:[#allocation2 + $0x28] sm:$0xff]  ;;  %355 = vmatprep.mubr.bf16.mxu1 %v2460_v38  ;;  %611 = vmatpush1.bf16.msra.mxu1 %v2283_v14  ;;  %v2316_v9 = vld [vmem:[#allocation4 + $0x140] ss:$8 sps:$4 sm:$0xff]   ;;  %v2327_v14 = vld [vmem:[#allocation4 + $0x4] ss:$8 sps:$4 sm:$0xff]  }
  0xf3   :  { %200 = vst.msk [vmem:[#allocation2 + $0x38] sm:$0xff] %vm192_vm2, %v183_v18  ;;  %v214_v22 = vpack.c.bf16 %v208_v20, %v207_v19  ;;  %612 = vmatprep.subr.bf16.mxu1 %v2288_v16  ;;  %v229_v25 = vld [vmem:[#allocation2 + $0x21] sm:$0xff]  ;;  %v2333_v18 = vld [vmem:[#allocation4 + $0xf4] ss:$8 sps:$4 sm:$0xff]  }
  0xf4   :  { %v2245_v23 = vpop.f32.mrf.mxu1  ;;  %v524_v47 = vld [vmem:[#allocation2 + $0x22] sm:$0xff]  ;;  %1270 = vmatpush1.bf16.msra.mxu0 %v2310_v5  ;;  %v2336_v20 = vld [vmem:[#allocation4 + $0x114] ss:$8 sps:$4 sm:$0xff]  }
  0xf5   :  { %2073 = vmatmul.mubr.msk.bf16.gmra.mxu0 %vm192_vm2, %v214_v22  ;;  %1271 = vmatprep.subr.bf16.mxu0 %v2318_v8  ;;  %v2325_v15 = vld [vmem:[#allocation4] ss:$8 sps:$4 sm:$0xff]   ;;  %v2330_v16 = vld [vmem:[#allocation4 + $0x124] ss:$8 sps:$4 sm:$0xff]   ;;  %v2331_v19 = vld [vmem:[#allocation4 + $0xf0] ss:$8 sps:$4 sm:$0xff]  }
  0xf6   :  { %v188_v24 = vpop.f32.mrf.mxu1  ;;  %v230_v26 = vld [vmem:[#allocation2 + $0x29] sm:$0xff]  ;;  %501 = vmatprep.mubr.bf16.mxu0 %v2460_v38  ;;  %613 = vmatpush1.bf16.msra.mxu1 %v2286_v21  ;;  %v2328_v17 = vld [vmem:[#allocation4 + $0x120] ss:$8 sps:$4 sm:$0xff]   ;;  %v2339_v22 = vld [vmem:[#allocation4 + $0xe4] ss:$8 sps:$4 sm:$0xff]  }
  0xf7   :  { %202 = vst.msk [vmem:[#allocation2 + $0x40] sm:$0xf] %vm201_vm3, %v188_v24  ;;  %v236_v27 = vpack.c.bf16 %v230_v26, %v229_v25  ;;  %v209_v29 = vld [vmem:[#allocation2 + $0x30] sm:$0xff]  ;;  %1506 = vmatprep.subr.bf16.mxu1 %v2291_v52  ;;  %v2337_v23 = vld [vmem:[#allocation4 + $0xe0] ss:$8 sps:$4 sm:$0xff]  }
  0xf8   :  { %v2248_v28 = vpop.f32.mrf.mxu1  ;;  %v525_v46 = vld [vmem:[#allocation2 + $0x2a] sm:$0xff]  ;;  %1272 = vmatpush1.bf16.msra.mxu0 %v2316_v9  ;;  %v2342_v24 = vld [vmem:[#allocation4 + $0x104] ss:$8 sps:$4 sm:$0xff]   ;;  %v2340_v25 = vld [vmem:[#allocation4 + $0x100] ss:$8 sps:$4 sm:$0xff]  }
  0xf9   :  { %2060 = vmatmul.mubr.msk.bf16.gmra.mxu1 %vm192_vm2, %v236_v27  ;;  %v531_v48 = vpack.c.bf16 %v525_v46, %v524_v47  ;;  %1273 = vmatprep.subr.bf16.mxu0 %v2324_v12  ;;  %v2334_v21 = vld [vmem:[#allocation4 + $0x110] ss:$8 sps:$4 sm:$0xff]   ;;  %v2345_v26 = vld [vmem:[#allocation4 + $0xd4] ss:$8 sps:$4 sm:$0xff]   ;;  %v2361_v41 = vld [vmem:[#allocation4 + $0xa0] ss:$8 sps:$4 sm:$0xff]  }
  0xfa   :  { %v210_v30 = vld [vmem:[#allocation2 + $0x38] sm:$0xff]  ;;  %365 = vmatprep.mubr.bf16.mxu1 %v2460_v38  ;;  %v2343_v27 = vld [vmem:[#allocation4 + $0xd0] ss:$8 sps:$4 sm:$0xff]   ;;  %v2348_v28 = vld [vmem:[#allocation4 + $0x1f4] ss:$8 sps:$4 sm:$0xff]  }
  0xfb   :  { %v215_v31 = vpack.c.bf16 %v210_v30, %v209_v29  ;;  %v231_v32 = vld [vmem:[#allocation2 + $0x31] sm:$0xff]  ;;  %v2351_v30 = vld [vmem:[#allocation4 + $0xc4] ss:$8 sps:$4 sm:$0xff]  }
  0xfc   :  { %v526_v50 = vld [vmem:[#allocation2 + $0x32] sm:$0xff]  ;;  %1274 = vmatpush1.bf16.msra.mxu0 %v2322_v13 }
  0xfd   :  { %2074 = vmatmul.mubr.msk.bf16.gmra.mxu0 %vm192_vm2, %v215_v31  ;;  %1275 = vmatprep.subr.bf16.mxu0 %v2330_v16  ;;  %v2346_v29 = vld [vmem:[#allocation4 + $0x1f0] ss:$8 sps:$4 sm:$0xff]   ;;  %v2349_v31 = vld [vmem:[#allocation4 + $0xc0] ss:$8 sps:$4 sm:$0xff]   ;;  %v2372_v46 = vld [vmem:[#allocation4 + $0x1b4] ss:$8 sps:$4 sm:$0xff]  }
  0xfe   :  { %v232_v33 = vld [vmem:[#allocation2 + $0x39] sm:$0xff]  ;;  %511 = vmatprep.mubr.bf16.mxu0 %v2460_v38  ;;  %v233_v37 = vld [vmem:[#allocation2 + $0x41] sm:$0x3]  ;;  %v2370_v47 = vld [vmem:[#allocation4 + $0x1b0] ss:$8 sps:$4 sm:$0xff]  }
  0xff   :  { %v237_v34 = vpack.c.bf16 %v232_v33, %v231_v32  ;;  %v211_v35 = vld [vmem:[#allocation2 + $0x40] sm:$0x3]  ;;  %v238_v39 = vpack.c.bf16 %v233_v37, %v233_v37  ;;  %v528_v54 = vld [vmem:[#allocation2 + $0x42] sm:$0x3]  ;;  %v2354_v32 = vld [vmem:[#allocation4 + $0x1e4] ss:$8 sps:$4 sm:$0xff]   ;;  %v699_v37 = vlaneseq }
 0x100   :  { %v216_v36 = vpack.c.bf16 %v211_v35, %v211_v35  ;;  %v527_v49 = vld [vmem:[#allocation2 + $0x3a] sm:$0xff]  ;;  %v533_v57 = vpack.c.bf16 %v528_v54, %v528_v54  ;;  %1276 = vmatpush1.bf16.msra.mxu0 %v2328_v17  ;;  %v2355_v35 = vld [vmem:[#allocation4 + $0xb0] ss:$8 sps:$4 sm:$0xff]  }
 0x101   :  { %2061 = vmatmul.mubr.msk.bf16.gmra.mxu1 %vm192_vm2, %v237_v34  ;;  %v532_v51 = vpack.c.bf16 %v527_v49, %v526_v50  ;;  %1277 = vmatprep.subr.bf16.mxu0 %v2336_v20  ;;  %v2352_v33 = vld [vmem:[#allocation4 + $0x1e0] ss:$8 sps:$4 sm:$0xff]   ;;  %v2357_v34 = vld [vmem:[#allocation4 + $0xb4] ss:$8 sps:$4 sm:$0xff]   ;;  %vm819_vm4 = vcmp.lt.s32.totalorder %v699_v37, 256 }
 0x102   :  { %375 = vmatprep.mubr.bf16.mxu1 %v2460_v38  ;;  %821 = vst.msk [vmem:[#allocation3] ss:$8 sm:$0x3] %vm819_vm4, %v2458_v0  ;;  %824 = vst.msk [vmem:[#allocation3 + $0x83] ss:$8 sm:$0x3] %vm819_vm4, %v2458_v0 }
 0x103   :  { %v2364_v43 = vld [vmem:[#allocation4 + $0x1c0] ss:$8 sps:$4 sm:$0xff]   ;;  %v2378_v50 = vld [vmem:[#allocation4 + $0x1a4] ss:$8 sps:$4 sm:$0xff]   ;;  %v2381_v0 = vld [vmem:[#allocation4 + $0x194] ss:$8 sps:$4 sm:$0xff]  }
 0x104   :  { %1278 = vmatpush1.bf16.msra.mxu0 %v2334_v21  ;;  %v2373_v49 = vld [vmem:[#allocation4 + $0x80] ss:$8 sps:$4 sm:$0xff]   ;;  %v2379_v52 = vld [vmem:[#allocation4 + $0x190] ss:$8 sps:$4 sm:$0xff]  }
 0x105   :  { %2075 = vmatmul.mubr.msk.bf16.gmra.mxu0 %vm192_vm2, %v216_v36  ;;  %1279 = vmatprep.subr.bf16.mxu0 %v2342_v24  ;;  %v2360_v36 = vld [vmem:[#allocation4 + $0x1d4] ss:$8 sps:$4 sm:$0xff]   ;;  %v2382_v54 = vld [vmem:[#allocation4 + $0x180] ss:$8 sps:$4 sm:$0xff]  }
 0x108   :  { %1280 = vmatpush1.bf16.msra.mxu0 %v2340_v25 }
 0x109   :  { %2062 = vmatmul.mubr.msk.bf16.gmra.mxu1 %vm192_vm2, %v238_v39  ;;  %1281 = vmatprep.subr.bf16.mxu0 %v2348_v28  ;;  %v2358_v39 = vld [vmem:[#allocation4 + $0x1d0] ss:$8 sps:$4 sm:$0xff]  }
 0x10a   :  { %630 = vmatprep.mubr.bf16.mxu1 %v2460_v38 }
 0x10c   :  { %1282 = vmatpush2.bf16.msra.mxu0 %v2346_v29 }
 0x10d   :  { %1283 = vmatprep.subr.bf16.mxu0 %v2354_v32 }
 0x110   :  { %1284 = vmatpush2.bf16.msra.mxu0 %v2352_v33  ;;  %v697_v33 = vld [vmem:[%s3091_s3] sm:$0x3] }
 0x111   :  { %2092 = vmatmul.mubr.msk.bf16.vlgmr.msra.gmra.mxu1 %vm192_vm2, %v529_v42  ;;  %1285 = vmatprep.subr.bf16.mxu0 %v2360_v36  ;;  %v2366_v42 = vld [vmem:[#allocation4 + $0x1c4] ss:$8 sps:$4 sm:$0xff]  }
 0x112   :  { %640 = vmatprep.mubr.bf16.mxu1 %v2460_v38  ;;  %1507 = vmatpush1.bf16.msra.mxu1 %v2289_v53  ;;  %v2384_v53 = vld [vmem:[#allocation4 + $0x184] ss:$8 sps:$4 sm:$0xff]  }
 0x113   :  { %1508 = vmatprep.subr.bf16.mxu1 %v2294_v55  ;;  %v2387_v55 = vld [vmem:[#allocation4 + $0x274] ss:$8 sps:$4 sm:$0xff]  }
 0x114   :  { %1286 = vmatpush2.bf16.msra.mxu0 %v2358_v39 }
 0x115   :  { %1287 = vmatprep.subr.bf16.mxu0 %v2366_v42 }
 0x116   :  { %1509 = vmatpush1.bf16.msra.mxu1 %v2292_v56 }
 0x117   :  { %1510 = vmatprep.subr.bf16.mxu1 %v2297_v58 }
 0x118   :  { %1288 = vmatpush2.bf16.msra.mxu0 %v2364_v43 }
 0x119   :  { %2093 = vmatmul.mubr.msk.bf16.gmra.mxu1 %vm192_vm2, %v530_v45  ;;  %v2367_v45 = vld [vmem:[#allocation4 + $0x90] ss:$8 sps:$4 sm:$0xff]   ;;  %1289 = vmatprep.subr.bf16.mxu0 %v2372_v46 }
 0x11a   :  { %650 = vmatprep.mubr.bf16.mxu1 %v2460_v38  ;;  %1511 = vmatpush1.bf16.msra.mxu1 %v2295_v59 }
 0x11b   :  { %1512 = vmatprep.subr.bf16.mxu1 %v2303_v62 }
 0x11c   :  { %1290 = vmatpush2.bf16.msra.mxu0 %v2370_v47  ;;  %v757_v47 = vpop.permute.xlu0 %756 }
 0x11d   :  { %1291 = vmatprep.subr.bf16.mxu0 %v2378_v50 }
 0x121   :  { %2094 = vmatmul.mubr.msk.bf16.gmra.mxu1 %vm192_vm2, %v531_v48  ;;  %v2375_v48 = vld [vmem:[#allocation4 + $0x84] ss:$8 sps:$4 sm:$0xff]  }
 0x122   :  { %660 = vmatprep.mubr.bf16.mxu1 %v2460_v38 }
 0x129   :  { %2095 = vmatmul.mubr.msk.bf16.gmra.mxu1 %vm192_vm2, %v532_v51  ;;  %v2376_v51 = vld [vmem:[#allocation4 + $0x1a0] ss:$8 sps:$4 sm:$0xff]  }
 0x12a   :  { %670 = vmatprep.mubr.bf16.mxu1 %v2460_v38  ;;  %v2301_v38 = vld [vmem:[#allocation4 + $0x40] ss:$8 sps:$4 sm:$0xff]   ;;  %1292 = vmatpush2.bf16.msra.mxu0 %v2376_v51 }
 0x12b   :  { %1513 = vmatpush1.bf16.msra.mxu1 %v2301_v38  ;;  %1293 = vmatprep.subr.bf16.mxu0 %v2381_v0 }
 0x12c   :  { %1514 = vmatprep.subr.bf16.mxu1 %v2309_v2 }
 0x12e   :  { %1294 = vmatpush2.bf16.msra.mxu0 %v2379_v52 }
 0x12f   :  { %1515 = vmatpush1.bf16.msra.mxu1 %v2307_v3  ;;  %1295 = vmatprep.subr.bf16.mxu0 %v2384_v53 }
 0x130   :  { %1516 = vmatprep.subr.bf16.mxu1 %v2315_v6 }
 0x131   :  { %2096 = vmatmul.mubr.msk.bf16.gmra.mxu1 %vm192_vm2, %v533_v57 }
 0x132   :  { %1296 = vmatpush2.bf16.msra.mxu0 %v2382_v54 }
 0x133   :  { %1517 = vmatpush1.bf16.msra.mxu1 %v2313_v7  ;;  %1827 = vmatprep.subr.bf16.mxu0 %v2387_v55 }
 0x134   :  { %1518 = vmatprep.subr.bf16.mxu1 %v2321_v10 }
 0x137   :  { %1519 = vmatpush1.bf16.msra.mxu1 %v2319_v11 }
 0x138   :  { %1520 = vmatprep.subr.bf16.mxu1 %v2327_v14 }
 0x13b   :  { %1521 = vmatpush1.bf16.msra.mxu1 %v2325_v15 }
 0x13c   :  { %1522 = vmatprep.subr.bf16.mxu1 %v2333_v18 }
 0x13f   :  { %1523 = vmatpush2.bf16.msra.mxu1 %v2331_v19 }
 0x140   :  { %1524 = vmatprep.subr.bf16.mxu1 %v2339_v22 }
 0x143   :  { %1525 = vmatpush2.bf16.msra.mxu1 %v2337_v23 }
 0x144   :  { %1526 = vmatprep.subr.bf16.mxu1 %v2345_v26  ;;  %v2765_v26 = vshrl.u32 %v699_v37, 7 }
 0x147   :  { %1527 = vmatpush2.bf16.msra.mxu1 %v2343_v27 }
 0x148   :  { %1528 = vmatprep.subr.bf16.mxu1 %v2351_v30 }
 0x14b   :  { %1529 = vmatpush2.bf16.msra.mxu1 %v2349_v31  ;;  %v701_v31 = vsub.s32 0, %v2765_v26 }
 0x14c   :  { %1530 = vmatprep.subr.bf16.mxu1 %v2357_v34  ;;  %v705_v34 = vsub.s32 1, %v2765_v26 }
 0x14d   :  { %v2778_v37 = vrot.slane %v697_v33, %v701_v31 }
 0x14e   :  { %v2782_v42 = vrot.slane %v697_v33, %v705_v34 }
 0x14f   :  { %1531 = vmatpush2.bf16.msra.mxu1 %v2355_v35 }
 0x150   :  { %1532 = vmatprep.subr.bf16.mxu1 %v2363_v40 }
 0x153   :  { %1533 = vmatpush2.bf16.msra.mxu1 %v2361_v41 }
 0x154   :  { %1534 = vmatprep.subr.bf16.mxu1 %v2369_v44 }
 0x157   :  { %1535 = vmatpush2.bf16.msra.mxu1 %v2367_v45 }
 0x158   :  { %1536 = vmatprep.subr.bf16.mxu1 %v2375_v48 }
 0x15b   :  { %1537 = vmatpush2.bf16.msra.mxu1 %v2373_v49 }
 0x1a5   :  { %v473_v56 = vpop.f32.mrf.mxu0 }
 0x1a7   :  { %v475_v57 = vpop.f32.mrf.mxu0 }
 0x1a9   :  { %v337_v58 = vpop.f32.mrf.mxu1  ;;  %v477_v59 = vpop.f32.mrf.mxu0 }
 0x1aa   :  { %v474_v36 = vadd.f32 %v473_v56, %v337_v58 }
 0x1ab   :  { %v339_v60 = vpop.f32.mrf.mxu1  ;;  %v479_v61 = vpop.f32.mrf.mxu0 }
 0x1ac   :  { %v476_v40 = vadd.f32 %v475_v57, %v339_v60 }
 0x1ad   :  { %v341_v62 = vpop.f32.mrf.mxu1  ;;  %v483_v38 = vpop.f32.mrf.mxu0 }
 0x1ae   :  { %v478_v44 = vadd.f32 %v477_v59, %v341_v62 }
 0x1af   :  { %v343_v63 = vpop.f32.mrf.mxu1  ;;  %v485_v1 = vpop.f32.mrf.mxu0 }
 0x1b0   :  { %v480_v49 = vadd.f32 %v479_v61, %v343_v63  ;;  %v762_v63 = vpop.permute.xlu0 %761 }
 0x1b1   :  { %v347_v2 = vpop.f32.mrf.mxu1  ;;  %v487_v3 = vpop.f32.mrf.mxu0 }
 0x1b2   :  { %v484_v57 = vadd.f32 %v483_v38, %v347_v2 }
 0x1b3   :  { %v349_v4 = vpop.f32.mrf.mxu1  ;;  %v489_v5 = vpop.f32.mrf.mxu0 }
 0x1b4   :  { %v486_v58 = vadd.f32 %v485_v1, %v349_v4 }
 0x1b5   :  { %v351_v6 = vpop.f32.mrf.mxu1  ;;  %v2728_v7 = vpop.f32.mrf.mxu0 }
 0x1b7   :  { %v353_v8 = vpop.f32.mrf.mxu1  ;;  %v2730_v9 = vpop.f32.mrf.mxu0 }
 0x1b8   :  { %v490_v61 = vadd.f32 %v489_v5, %v353_v8 }
 0x1b9   :  { %v2732_v10 = vpop.f32.mrf.mxu1  ;;  %v2734_v11 = vpop.f32.mrf.mxu0 }
 0x1ba   :  { %v494_v38 = vadd.f32 %v2728_v7, %v2732_v10 }
 0x1bb   :  { %v2736_v12 = vpop.f32.mrf.mxu1  ;;  %v2738_v13 = vpop.f32.mrf.mxu0 }
 0x1bc   :  { %v496_v1 = vadd.f32 %v2730_v9, %v2736_v12 }
 0x1bd   :  { %v2740_v14 = vpop.f32.mrf.mxu1  ;;  %v2742_v15 = vpop.f32.mrf.mxu0 }
 0x1be   :  { %v498_v2 = vadd.f32 %v2734_v11, %v2740_v14 }
 0x1bf   :  { %v2744_v16 = vpop.f32.mrf.mxu1  ;;  %v2746_v17 = vpop.f32.mrf.mxu0 }
 0x1c1   :  { %v2748_v18 = vpop.f32.mrf.mxu1  ;;  %v2750_v19 = vpop.f32.mrf.mxu0 }
 0x1c2   :  { %v504_v7 = vadd.f32 %v2742_v15, %v2748_v18 }
 0x1c3   :  { %v2752_v20 = vpop.f32.mrf.mxu1  ;;  %v2754_v21 = vpop.f32.mrf.mxu0 }
 0x1c4   :  { %v2802_v9 = vadd.f32 %v2746_v17, %v2752_v20 }
 0x1c5   :  { %v2756_v22 = vpop.f32.mrf.mxu1  ;;  %v2758_v23 = vpop.f32.mrf.mxu0 }
 0x1c7   :  { %v2760_v24 = vpop.f32.mrf.mxu1  ;;  %v2762_v25 = vpop.f32.mrf.mxu0 }
 0x1c9   :  { %v2767_v27 = vpop.f32.mrf.mxu1  ;;  %v517_v28 = vpop.f32.mrf.mxu0 }
 0x1cb   :  { %v2769_v29 = vpop.f32.mrf.mxu1  ;;  %v518_v30 = vpop.f32.mrf.mxu0 }
 0x1cd   :  { %v381_v32 = vpop.f32.mrf.mxu1 }
 0x1ce   :  { %v488_v32 = vadd.f32 %v487_v3, %v351_v6  ;;  %v767_v3 = vpop.permute.xlu1 %766 }
 0x1cf   :  { %v382_v35 = vpop.f32.mrf.mxu1 }
 0x1d1   :  { %v632_v39 = vpop.f32.mrf.mxu1 }
 0x1d2   :  { %v679_v41 = vadd.f32 %v632_v39, %v474_v36 }
 0x1d3   :  { %v634_v43 = vpop.f32.mrf.mxu1 }
 0x1d4   :  { %v709_v45 = vadd.f32 %v2778_v37, %v679_v41  ;;  %v680_v46 = vadd.f32 %v634_v43, %v476_v40 }
 0x1d5   :  { %v636_v48 = vpop.f32.mrf.mxu1 }
 0x1d6   :  { %v727_v50 = vmax.f32 %v709_v45, 0.0  ;;  %v710_v51 = vadd.f32 %v2782_v42, %v680_v46  ;;  %v681_v0 = vadd.f32 %v636_v48, %v478_v44  ;;  %v500_v45 = vadd.f32 %v2738_v13, %v2744_v16 }
 0x1d7   :  { %v638_v52 = vpop.f32.mrf.mxu1  ;;  %v2810_v48 = vadd.f32 %v2750_v19, %v2756_v22  ;;  %v2814_v13 = vadd.f32 %v2754_v21, %v2760_v24  ;;  %v2825_v19 = vadd.f32 %v2762_v25, %v2769_v29  ;;  %v772_v22 = vpop.permute.xlu1 %771 }
 0x1d8   :  { %v799_v53 = vmul.f32 %v757_v47, %v727_v50  ;;  %v728_v54 = vmax.f32 %v710_v51, 0.0  ;;  %v711_v55 = vadd.f32 %v2778_v37, %v681_v0  ;;  %v682_v56 = vadd.f32 %v638_v52, %v480_v49 }
 0x1d9   :  { %v642_v60 = vpop.f32.mrf.mxu1  ;;  %v2821_v51 = vadd.f32 %v2758_v23, %v2767_v27 }
 0x1da   :  { %v845_v59 = vrot.slane %v799_v53, 7  ;;  %v800_v62 = vmul.f32 %v757_v47, %v728_v54  ;;  %v729_v28 = vmax.f32 %v711_v55, 0.0  ;;  %v712_v30 = vadd.f32 %v2782_v42, %v682_v56 }
 0x1db   :  { %v683_v33 = vadd.f32 %v642_v60, %v484_v57  ;;  %v644_v35 = vpop.f32.mrf.mxu1 }
 0x1dc   :  { %897 = vst [vmem:[#allocation3] sm:$0xfe] %v845_v59  ;;  %v846_v36 = vrot.slane %v800_v62, 7  ;;  %v801_v39 = vmul.f32 %v762_v63, %v729_v28  ;;  %v730_v40 = vmax.f32 %v712_v30, 0.0  ;;  %v684_v41 = vadd.f32 %v644_v35, %v486_v58 }
 0x1dd   :  { %v713_v4 = vadd.f32 %v2778_v37, %v683_v33  ;;  %v646_v5 = vpop.f32.mrf.mxu1 }
 0x1de   :  { %898 = vst [vmem:[#allocation3 + $0x8] sm:$0xfe] %v846_v36  ;;  %v847_v6 = vrot.slane %v801_v39, 7  ;;  %v802_v8 = vmul.f32 %v762_v63, %v730_v40  ;;  %v714_v43 = vadd.f32 %v2782_v42, %v684_v41  ;;  %v685_v44 = vadd.f32 %v646_v5, %v488_v32 }
 0x1df   :  { %v731_v10 = vmax.f32 %v713_v4, 0.0  ;;  %v648_v11 = vpop.f32.mrf.mxu1 }
 0x1e0   :  { %v2805_v12 = vsel %vm844_vm5, %v845_v59, %v847_v6  ;;  %v849_v14 = vrot.slane %v802_v8, 7  ;;  %v732_v46 = vmax.f32 %v714_v43, 0.0  ;;  %v715_v47 = vadd.f32 %v2778_v37, %v685_v44 }
 0x1e1   :  { %v803_v15 = vmul.f32 %v767_v3, %v731_v10  ;;  %v686_v16 = vadd.f32 %v648_v11, %v490_v61  ;;  %v652_v17 = vpop.f32.mrf.mxu1  ;;  %v777_v61 = vpop.permute.xlu0 %776 }
 0x1e2   :  { %v2817_v18 = vsel %vm844_vm5, %v846_v36, %v849_v14  ;;  %v804_v20 = vmul.f32 %v767_v3, %v732_v46  ;;  %v733_v49 = vmax.f32 %v715_v47, 0.0  ;;  %v687_v50 = vadd.f32 %v652_v17, %v494_v38 }
 0x1e3   :  { %v851_v21 = vrot.slane %v803_v15, 7  ;;  %v716_v24 = vadd.f32 %v2782_v42, %v686_v16  ;;  %v654_v0 = vpop.f32.mrf.mxu1  ;;  %v915_v52 = vld [vmem:[#allocation3] sm:$0xff]  ;;  %v782_v15 = vpop.permute.xlu1 %781 }
 0x1e4   :  { %v975_v53 = vld [vmem:[#allocation3] sm:$0xfe]  ;;  %v853_v54 = vrot.slane %v804_v20, 7  ;;  %v805_v55 = vmul.f32 %v772_v22, %v733_v49  ;;  %v717_v56 = vadd.f32 %v2778_v37, %v687_v50  ;;  %v688_v57 = vadd.f32 %v654_v0, %v496_v1 }
 0x1e5   :  { %v852_v58 = vsel %vm844_vm5, %v847_v6, %v851_v21  ;;  %v734_v23 = vmax.f32 %v716_v24, 0.0  ;;  %v656_v27 = vpop.f32.mrf.mxu1  ;;  %v916_v60 = vld [vmem:[#allocation3 + $0x8] sm:$0xff]  ;;  %v933_v25 = vpack.c.bf16 %v2805_v12, %v915_v52  ;;  %v2832_v29 = vpack.c.bf16 %v2805_v12, %v975_v53 }
 0x1e6   :  { %v976_v59 = vld [vmem:[#allocation3 + $0x8] sm:$0xfe]  ;;  %v854_v62 = vsel %vm844_vm5, %v849_v14, %v853_v54  ;;  %v855_v28 = vrot.slane %v805_v55, 7  ;;  %v735_v30 = vmax.f32 %v717_v56, 0.0  ;;  %v718_v32 = vadd.f32 %v2782_v42, %v688_v57  ;;  %v787_v55 = vpop.permute.xlu0 %786 }
 0x1e7   :  { %v806_v63 = vmul.f32 %v772_v22, %v734_v23  ;;  %v689_v33 = vadd.f32 %v656_v27, %v498_v2  ;;  %v658_v35 = vpop.f32.mrf.mxu1  ;;  %v934_v36 = vpack.c.bf16 %v2817_v18, %v916_v60  ;;  %v980_v39 = vpack.c.bf16 %v2817_v18, %v976_v59 }
 0x1e8   :  { %v856_v40 = vsel %vm844_vm5, %v851_v21, %v855_v28  ;;  %v807_v41 = vmul.f32 %v777_v61, %v735_v30  ;;  %v736_v38 = vmax.f32 %v718_v32, 0.0  ;;  %v690_v1 = vadd.f32 %v658_v35, %v500_v45 }
 0x1e9   :  { %v857_v3 = vrot.slane %v806_v63, 7  ;;  %v719_v4 = vadd.f32 %v2778_v37, %v689_v33  ;;  %v662_v5 = vpop.f32.mrf.mxu1  ;;  %1538 = vmatprep.mubr.bf16.mxu1 %v934_v36  ;;  %v2840_v6 = vpack.c.bf16 %v856_v40, %v852_v58  ;;  %v1030_v8 = vshrl.u32 %v980_v39, 16  ;;  %v792_v36 = vpop.permute.xlu1 %791 }
 0x1ea   :  { %v859_v43 = vrot.slane %v807_v41, 7  ;;  %v808_v2 = vmul.f32 %v777_v61, %v736_v38  ;;  %v720_v44 = vadd.f32 %v2782_v42, %v690_v1  ;;  %v691_v10 = vadd.f32 %v662_v5, %v504_v7  ;;  %1539 = vmatmul.mubr.bf16.vlgmr.msra.gmra.mxu1 %v933_v25 }
 0x1eb   :  { %v858_v11 = vsel %vm844_vm5, %v853_v54, %v857_v3  ;;  %v737_v14 = vmax.f32 %v719_v4, 0.0  ;;  %v664_v46 = vpop.f32.mrf.mxu1  ;;  %v1032_v45 = vshll.u32 %v980_v39, 16  ;;  %v1018_v47 = vshrl.u32 %v2832_v29, 16 }
 0x1ec   :  { %v860_v16 = vsel %vm844_vm5, %v855_v28, %v859_v43  ;;  %v861_v17 = vrot.slane %v808_v2, 7  ;;  %v738_v20 = vmax.f32 %v720_v44, 0.0  ;;  %v721_v49 = vadd.f32 %v2778_v37, %v691_v10 }
 0x1ed   :  { %v809_v50 = vmul.f32 %v782_v15, %v737_v14  ;;  %v692_v22 = vadd.f32 %v664_v46, %v2802_v9  ;;  %v666_v7 = vpop.f32.mrf.mxu1  ;;  %v2848_v21 = vpack.c.bf16 %v858_v11, %v854_v62  ;;  %v1034_v24 = vrot.slane %v1032_v45, 1 }
 0x1ee   :  { %v862_v0 = vsel %vm844_vm5, %v857_v3, %v861_v17  ;;  %v810_v52 = vmul.f32 %v782_v15, %v738_v20  ;;  %v739_v53 = vmax.f32 %v721_v49, 0.0  ;;  %v693_v54 = vadd.f32 %v666_v7, %v2810_v48  ;;  %v797_v49 = vpop.permute.xlu0 %796 }
 0x1ef   :  { %v863_v56 = vrot.slane %v809_v50, 7  ;;  %v722_v57 = vadd.f32 %v2782_v42, %v692_v22  ;;  %v668_v58 = vpop.f32.mrf.mxu1  ;;  %1548 = vmatprep.mubr.bf16.mxu1 %v2848_v21  ;;  %v1035_v23 = vor.u32 %v1034_v24, %v1030_v8  ;;  %v1037_v9 = vshll.u32 %v2848_v21, 16  ;;  %v2390_v22 = vld [vmem:[#allocation4 + $0x264] ss:$8 sps:$4 sm:$0xff]  }
 0x1f0   :  { %v865_v27 = vrot.slane %v810_v52, 7  ;;  %v811_v60 = vmul.f32 %v787_v55, %v739_v53  ;;  %v723_v59 = vadd.f32 %v2778_v37, %v693_v54  ;;  %v694_v25 = vadd.f32 %v668_v58, %v2814_v13 }
 0x1f1   :  { %v864_v62 = vsel %vm844_vm5, %v859_v43, %v863_v56  ;;  %v740_v28 = vmax.f32 %v722_v57, 0.0  ;;  %v672_v48 = vpop.f32.mrf.mxu1  ;;  %v1039_v30 = vrot.slane %v1037_v9, 1  ;;  %v1020_v32 = vshll.u32 %v2832_v29, 16  ;;  %v2393_v9 = vld [vmem:[#allocation4 + $0x254] ss:$8 sps:$4 sm:$0xff]  }
 0x1f2   :  { %v866_v61 = vsel %vm844_vm5, %v861_v17, %v865_v27  ;;  %v867_v63 = vrot.slane %v811_v60, 7  ;;  %v741_v33 = vmax.f32 %v723_v59, 0.0  ;;  %v724_v35 = vadd.f32 %v2782_v42, %v694_v25  ;;  %1549 = vmatmul.mubr.bf16.gmra.mxu1 %v2840_v6  ;;  %v2385_v17 = vld [vmem:[#allocation4 + $0x270] ss:$8 sps:$4 sm:$0xff]  }
 0x1f3   :  { %v812_v39 = vmul.f32 %v787_v55, %v740_v28  ;;  %v695_v40 = vadd.f32 %v672_v48, %v2821_v51  ;;  %v674_v13 = vpop.f32.mrf.mxu1  ;;  %v1040_v41 = vsel %vm1016_vm6, %v1035_v23, %v1039_v30  ;;  %v1022_v38 = vrot.slane %v1020_v32, 1  ;;  %v2388_v55 = vld [vmem:[#allocation4 + $0x260] ss:$8 sps:$4 sm:$0xff]  }
 0x1f4   :  { %v868_v1 = vsel %vm844_vm5, %v863_v56, %v867_v63  ;;  %v813_v3 = vmul.f32 %v792_v36, %v741_v33  ;;  %v742_v29 = vmax.f32 %v724_v35, 0.0  ;;  %v696_v4 = vadd.f32 %v674_v13, %v2825_v19  ;;  %1297 = vmatprep.mubr.bf16.mxu0 %v1040_v41 }
 0x1f5   :  { %v869_v5 = vrot.slane %v812_v39, 7  ;;  %v725_v8 = vadd.f32 %v2778_v37, %v695_v40  ;;  %v676_v43 = vpop.f32.mrf.mxu1  ;;  %v1023_v2 = vor.u32 %v1022_v38, %v1018_v47  ;;  %v1025_v44 = vshll.u32 %v2840_v6, 16 }
 0x1f6   :  { %v871_v10 = vrot.slane %v813_v3, 7  ;;  %v814_v51 = vmul.f32 %v792_v36, %v742_v29  ;;  %v726_v11 = vadd.f32 %v2782_v42, %v696_v4  ;;  %v2869_v14 = vpack.c.bf16 %v866_v61, %v862_v0  ;;  %v2391_v61 = vld [vmem:[#allocation4 + $0x250] ss:$8 sps:$4 sm:$0xff]   ;;  %v2396_v36 = vld [vmem:[#allocation4 + $0x244] ss:$8 sps:$4 sm:$0xff]  }
 0x1f7   :  { %v870_v46 = vsel %vm844_vm5, %v865_v27, %v869_v5  ;;  %v743_v45 = vmax.f32 %v725_v8, 0.0  ;;  %v677_v15 = vpop.f32.mrf.mxu1  ;;  %v1027_v19 = vrot.slane %v1025_v44, 1  ;;  %v2872_v20 = vpack.c.bf16 %v864_v62, %v860_v16  ;;  %v2394_v3 = vld [vmem:[#allocation4 + $0x240] ss:$8 sps:$4 sm:$0xff]   ;;  %v2399_v8 = vld [vmem:[#allocation4 + $0x234] ss:$8 sps:$4 sm:$0xff]  }
 0x1f8   :  { %v872_v37 = vsel %vm844_vm5, %v867_v63, %v871_v10  ;;  %v873_v47 = vrot.slane %v814_v51, 7  ;;  %v744_v50 = vmax.f32 %v726_v11, 0.0  ;;  %1558 = vmatprep.mubr.bf16.mxu1 %v2869_v14  ;;  %v1049_v24 = vshrl.u32 %v2848_v21, 16 }
 0x1f9   :  { %v815_v7 = vmul.f32 %v797_v49, %v743_v45  ;;  %v1028_v42 = vsel %vm1016_vm6, %v1023_v2, %v1027_v19  ;;  %v1053_v0 = vshll.u32 %v2869_v14, 16  ;;  %v1045_v16 = vshll.u32 %v2872_v20, 16 }
 0x1fa   :  { %v874_v52 = vsel %vm844_vm5, %v869_v5, %v873_v47  ;;  %v816_v53 = vmul.f32 %v797_v49, %v744_v50  ;;  %1298 = vmatmul.mubr.bf16.vlgmr.msra.gmra.mxu0 %v1028_v42  ;;  %1559 = vmatmul.mubr.bf16.gmra.mxu1 %v2872_v20  ;;  %v1051_v56 = vor.u32 %v1049_v24, %v1039_v30  ;;  %v1041_v27 = vshrl.u32 %v2840_v6, 16  ;;  %v1587_v30 = vld [vmem:[#allocation3] sm:$0xfc]  ;;  %v2402_v50 = vld [vmem:[#allocation4 + $0x224] ss:$8 sps:$4 sm:$0xff]  }
 0x1fb   :  { %v875_v54 = vrot.slane %v815_v7, 7  ;;  %1828 = vmatpush1.bf16.msra.mxu0 %v2385_v17  ;;  %v1055_v57 = vrot.slane %v1053_v0, 1  ;;  %v2882_v58 = vpack.c.bf16 %v874_v52, %v870_v46  ;;  %v1047_v60 = vrot.slane %v1045_v16, 1  ;;  %v2405_v16 = vld [vmem:[#allocation4 + $0x214] ss:$8 sps:$4 sm:$0xff]  }
 0x1fc   :  { %v877_v23 = vrot.slane %v816_v53, 7  ;;  %1829 = vmatprep.subr.bf16.mxu0 %v2390_v22  ;;  %v2885_v59 = vpack.c.bf16 %v872_v37, %v868_v1  ;;  %v1065_v28 = vshrl.u32 %v2869_v14, 16  ;;  %v1043_v63 = vor.u32 %v1041_v27, %v1027_v19  ;;  %v2400_v53 = vld [vmem:[#allocation4 + $0x220] ss:$8 sps:$4 sm:$0xff]  }
 0x1fd   :  { %v876_v25 = vsel %vm844_vm5, %v871_v10, %v875_v54  ;;  %v1056_v62 = vsel %vm1016_vm6, %v1051_v56, %v1055_v57  ;;  %1568 = vmatprep.mubr.bf16.mxu1 %v2882_v58  ;;  %v1069_v48 = vshll.u32 %v2882_v58, 16  ;;  %v1591_v39 = vpack.c.bf16 %v2805_v12, %v1587_v30 }
 0x1fe   :  { %913 = vst [vmem:[#allocation3 + $0x80] sm:$0x7] %v876_v25  ;;  %v878_v32 = vsel %vm844_vm5, %v873_v47, %v877_v23  ;;  %1307 = vmatprep.mubr.bf16.mxu0 %v1056_v62  ;;  %v1067_v33 = vor.u32 %v1065_v28, %v1055_v57  ;;  %v1048_v40 = vsel %vm1016_vm6, %v1043_v63, %v1047_v60  ;;  %v1061_v41 = vshll.u32 %v2885_v59, 16  ;;  %v2403_v23 = vld [vmem:[#allocation4 + $0x210] ss:$8 sps:$4 sm:$0xff]  }
 0x1ff   :  { %914 = vst [vmem:[#allocation3 + $0x88] sm:$0x7] %v878_v32  ;;  %1830 = vmatpush1.bf16.msra.mxu0 %v2388_v55  ;;  %v1071_v35 = vrot.slane %v1069_v48, 1  ;;  %v1640_v38 = vrot.slane %v2840_v6, 1  ;;  %v1639_v1 = vrot.slane %v1591_v39, 1  ;;  %v1647_v29 = vrot.slane %v2869_v14, 1 }
 0x200   :  { %1831 = vmatprep.subr.bf16.mxu0 %v2393_v9  ;;  %v1645_v4 = vrot.slane %v2872_v20, 1  ;;  %v1651_v12 = vrot.slane %v2882_v58, 1  ;;  %v1649_v5 = vrot.slane %v2885_v59, 1  ;;  %v1057_v43 = vshrl.u32 %v2872_v20, 16  ;;  %v2397_v20 = vld [vmem:[#allocation4 + $0x230] ss:$8 sps:$4 sm:$0xff]  }
 0x201   :  { %v1072_v13 = vsel %vm1016_vm6, %v1067_v33, %v1071_v35  ;;  %v2905_v6 = vsel %vm1638_vm7, %v1639_v1, %v1640_v38  ;;  %v1063_v2 = vrot.slane %v1061_v41, 1  ;;  %v1081_v7 = vshrl.u32 %v2882_v58, 16  ;;  %v1588_v62 = vld [vmem:[#allocation3 + $0x8] sm:$0xfc]  ;;  %v2406_v28 = vld [vmem:[#allocation4 + $0x200] ss:$8 sps:$4 sm:$0xff]  }
 0x202   :  { %1308 = vmatmul.mubr.bf16.gmra.mxu0 %v1048_v40  ;;  %1569 = vmatmul.mubr.bf16.gmra.mxu1 %v2885_v59  ;;  %v2908_v51 = vsel %vm1638_vm7, %v1640_v38, %v1645_v4  ;;  %v2915_v11 = vsel %vm1638_vm7, %v1647_v29, %v1651_v12  ;;  %v2920_v46 = vsel %vm1638_vm7, %v1645_v4, %v1649_v5  ;;  %v1073_v55 = vshrl.u32 %v2885_v59, 16  ;;  %v2411_v48 = vld [vmem:[#allocation4 + $0x2f4] ss:$8 sps:$4 sm:$0xff]   ;;  %v2409_v63 = vld [vmem:[#allocation4 + $0x2f0] ss:$8 sps:$4 sm:$0xff]  }
 0x203   :  { %1832 = vmatpush1.bf16.msra.mxu0 %v2391_v61  ;;  %1317 = vmatprep.mubr.bf16.mxu0 %v1072_v13  ;;  %v1059_v49 = vor.u32 %v1057_v43, %v1047_v60  ;;  %v1083_v0 = vor.u32 %v1081_v7, %v1071_v35  ;;  %v2408_v60 = vld [vmem:[#allocation4 + $0x204] ss:$8 sps:$4 sm:$0xff]   ;;  %v1592_v30 = vpack.c.bf16 %v2817_v18, %v1588_v62  ;;  %v1643_v61 = vrot.slane %v2848_v21, 1  ;;  %v2412_v40 = vld [vmem:[#allocation4 + $0x2e0] ss:$8 sps:$4 sm:$0xff]  }
 0x204   :  { %1833 = vmatprep.subr.bf16.mxu0 %v2396_v36  ;;  %v1075_v9 = vor.u32 %v1073_v55, %v1063_v2  ;;  %v2414_v36 = vld [vmem:[#allocation4 + $0x2e4] ss:$8 sps:$4 sm:$0xff]   ;;  %v2417_v13 = vld [vmem:[#allocation4 + $0x2d4] ss:$8 sps:$4 sm:$0xff]   ;;  %v2415_v41 = vld [vmem:[#allocation4 + $0x2d0] ss:$8 sps:$4 sm:$0xff]  }
 0x205   :  { %v931_v44 = vld [vmem:[#allocation3 + $0x80] sm:$0x3]  ;;  %v1064_v22 = vsel %vm1016_vm6, %v1059_v49, %v1063_v2  ;;  %v1642_v35 = vrot.slane %v1592_v30, 1  ;;  %v2420_v18 = vld [vmem:[#allocation4 + $0x2c4] ss:$8 sps:$4 sm:$0xff]  }
 0x206   :  { %v977_v10 = vld [vmem:[#allocation3 + $0x80] sm:$0x7]  ;;  %v932_v45 = vld [vmem:[#allocation3 + $0x88] sm:$0x3]  ;;  %v941_v47 = vpack.c.bf16 %v931_v44, %v931_v44  ;;  %v2418_v21 = vld [vmem:[#allocation4 + $0x2c0] ss:$8 sps:$4 sm:$0xff]  }
 0x207   :  { %v978_v15 = vld [vmem:[#allocation3 + $0x88] sm:$0x7]  ;;  %v981_v17 = vpack.c.bf16 %v977_v10, %v977_v10  ;;  %1834 = vmatpush1.bf16.msra.mxu0 %v2394_v3  ;;  %v942_v19 = vpack.c.bf16 %v932_v45, %v932_v45  ;;  %v1644_v39 = vsel %vm1638_vm7, %v1642_v35, %v1643_v61  ;;  %v2423_v38 = vld [vmem:[#allocation4 + $0x2b4] ss:$8 sps:$4 sm:$0xff]   ;;  %v2426_v3 = vld [vmem:[#allocation4 + $0x2a4] ss:$8 sps:$4 sm:$0xff]   ;;  %v1648_v10 = vsel %vm1638_vm7, %v1643_v61, %v1647_v29 }
 0x208   :  { %v982_v37 = vpack.c.bf16 %v978_v15, %v978_v15  ;;  %1835 = vmatprep.subr.bf16.mxu0 %v2399_v8  ;;  %v2421_v1 = vld [vmem:[#allocation4 + $0x2b0] ss:$8 sps:$4 sm:$0xff]   ;;  %v2424_v4 = vld [vmem:[#allocation4 + $0x2a0] ss:$8 sps:$4 sm:$0xff]   ;;  %v2429_v8 = vld [vmem:[#allocation4 + $0x294] ss:$8 sps:$4 sm:$0xff]  }
 0x209   :  { %1578 = vmatprep.mubr.bf16.mxu1 %v942_v19  ;;  %v1077_v24 = vshll.u32 %v981_v17, 16  ;;  %v1089_v32 = vshrl.u32 %v981_v17, 16  ;;  %v2427_v43 = vld [vmem:[#allocation4 + $0x290] ss:$8 sps:$4 sm:$0xff]   ;;  %v2432_v2 = vld [vmem:[#allocation4 + $0x284] ss:$8 sps:$4 sm:$0xff]  }
 0x20a   :  { %v1085_v42 = vshll.u32 %v982_v37, 16  ;;  %1318 = vmatmul.mubr.bf16.gmra.mxu0 %v1064_v22  ;;  %1579 = vmatmul.mubr.bf16.gmra.mxu1 %v941_v47  ;;  %v1092_v57 = vshrl.u32 %v982_v37, 16  ;;  %v2430_v44 = vld [vmem:[#allocation4 + $0x280] ss:$8 sps:$4 sm:$0xff]   ;;  %v1590_v45 = vld [vmem:[#allocation3 + $0x88] sm:$0xf] }
 0x20b   :  { %1836 = vmatpush1.bf16.msra.mxu0 %v2397_v20  ;;  %v1079_v56 = vrot.slane %v1077_v24, 1  ;;  %v1594_v15 = vpack.c.bf16 %v1590_v45, %v1590_v45  ;;  %v1589_v19 = vld [vmem:[#allocation3 + $0x80] sm:$0xf] }
 0x20c   :  { %v1087_v52 = vrot.slane %v1085_v42, 1  ;;  %1837 = vmatprep.subr.bf16.mxu0 %v2402_v50  ;;  %v1593_v20 = vpack.c.bf16 %v1589_v19, %v1589_v19 }
 0x20d   :  { %v1080_v25 = vsel %vm1016_vm6, %v1075_v9, %v1079_v56  ;;  %v1091_v33 = vor.u32 %v1089_v32, %v1079_v56  ;;  %v1655_v17 = vrot.slane %v1594_v15, 1 }
 0x20e   :  { %v1088_v54 = vsel %vm1016_vm6, %v1083_v0, %v1087_v52  ;;  %v1094_v27 = vor.u32 %v1092_v57, %v1087_v52  ;;  %v1653_v14 = vrot.slane %v1593_v20, 1 }
 0x20f   :  { %1327 = vmatprep.mubr.bf16.mxu0 %v1088_v54  ;;  %1838 = vmatpush1.bf16.msra.mxu0 %v2400_v53 }
 0x210   :  { %1839 = vmatprep.subr.bf16.mxu0 %v2405_v16  ;;  %v1654_v29 = vsel %vm1638_vm7, %v1649_v5, %v1653_v14 }
 0x212   :  { %1328 = vmatmul.mubr.bf16.gmra.mxu0 %v1080_v25 }
 0x213   :  { %1840 = vmatpush1.bf16.msra.mxu0 %v2403_v23  ;;  %1337 = vmatprep.mubr.bf16.mxu0 %v1094_v27 }
 0x214   :  { %1841 = vmatprep.subr.bf16.mxu0 %v2408_v60 }
 0x217   :  { %1842 = vmatpush1.bf16.msra.mxu0 %v2406_v28 }
 0x218   :  { %1843 = vmatprep.subr.bf16.mxu0 %v2411_v48 }
 0x21a   :  { %1338 = vmatmul.mubr.bf16.gmra.mxu0 %v1091_v33 }
 0x21b   :  { %1844 = vmatpush2.bf16.msra.mxu0 %v2409_v63  ;;  %1859 = vmatprep.mubr.bf16.mxu0 %v1644_v39 }
 0x21c   :  { %1845 = vmatprep.subr.bf16.mxu0 %v2414_v36 }
 0x21f   :  { %1846 = vmatpush2.bf16.msra.mxu0 %v2412_v40 }
 0x220   :  { %1847 = vmatprep.subr.bf16.mxu0 %v2417_v13 }
 0x223   :  { %1848 = vmatpush2.bf16.msra.mxu0 %v2415_v41 }
 0x224   :  { %1849 = vmatprep.subr.bf16.mxu0 %v2420_v18  ;;  %v1926_v18 = vld [vmem:[%s3093_s5] sm:$0x3] }
 0x227   :  { %1850 = vmatpush2.bf16.msra.mxu0 %v2418_v21 }
 0x228   :  { %1851 = vmatprep.subr.bf16.mxu0 %v2423_v38  ;;  %v2988_v38 = vrot.slane %v1926_v18, %v701_v31 }
 0x22b   :  { %1852 = vmatpush2.bf16.msra.mxu0 %v2421_v1 }
 0x22c   :  { %1853 = vmatprep.subr.bf16.mxu0 %v2426_v3 }
 0x22f   :  { %1854 = vmatpush2.bf16.msra.mxu0 %v2424_v4 }
 0x230   :  { %1855 = vmatprep.subr.bf16.mxu0 %v2429_v8  ;;  %v2992_v8 = vrot.slane %v1926_v18, %v705_v34 }
 0x233   :  { %1856 = vmatpush2.bf16.msra.mxu0 %v2427_v43 }
 0x234   :  { %1857 = vmatprep.subr.bf16.mxu0 %v2432_v2 }
 0x237   :  { %1858 = vmatpush2.bf16.msra.mxu0 %v2430_v44 }
 0x23a   :  { %1860 = vmatmul.mubr.bf16.vlgmr.msra.gmra.mxu0 %v2905_v6  ;;  %v1656_v6 = vsel %vm1638_vm7, %v1651_v12, %v1655_v17 }
 0x23b   :  { %1869 = vmatprep.mubr.bf16.mxu0 %v1648_v10 }
 0x242   :  { %1870 = vmatmul.mubr.bf16.gmra.mxu0 %v2908_v51 }
 0x243   :  { %1879 = vmatprep.mubr.bf16.mxu0 %v2915_v11 }
 0x24a   :  { %1880 = vmatmul.mubr.bf16.gmra.mxu0 %v2920_v46 }
 0x24b   :  { %1889 = vmatprep.mubr.bf16.mxu0 %v1656_v6 }
 0x252   :  { %1890 = vmatmul.mubr.bf16.gmra.mxu0 %v1654_v29 }
 0x253   :  { %1899 = vmatprep.mubr.bf16.mxu0 %v1655_v17 }
 0x25a   :  { %1900 = vmatmul.mubr.bf16.gmra.mxu0 %v1653_v14 }
 0x2aa   :  { %v1540_v51 = vpop.f32.mrf.mxu1 }
 0x2ac   :  { %v1542_v11 = vpop.f32.mrf.mxu1 }
 0x2ae   :  { %v1544_v49 = vpop.f32.mrf.mxu1 }
 0x2b0   :  { %v1546_v37 = vpop.f32.mrf.mxu1 }
 0x2b2   :  { %v1550_v47 = vpop.f32.mrf.mxu1 }
 0x2b4   :  { %v1552_v50 = vpop.f32.mrf.mxu1 }
 0x2b6   :  { %v2943_v46 = vpop.f32.mrf.mxu1 }
 0x2b8   :  { %v2945_v58 = vpop.f32.mrf.mxu1 }
 0x2ba   :  { %v1299_v12 = vpop.f32.mrf.mxu0  ;;  %v1560_v22 = vpop.f32.mrf.mxu1 }
 0x2bb   :  { %v1541_v21 = vadd.f32 %v1540_v51, %v1299_v12 }
 0x2bc   :  { %v1301_v7 = vpop.f32.mrf.mxu0  ;;  %v1562_v42 = vpop.f32.mrf.mxu1 }
 0x2bd   :  { %v1543_v3 = vadd.f32 %v1542_v11, %v1301_v7 }
 0x2be   :  { %v1303_v59 = vpop.f32.mrf.mxu0  ;;  %v2947_v24 = vpop.f32.mrf.mxu1 }
 0x2bf   :  { %v1545_v2 = vadd.f32 %v1544_v49, %v1303_v59 }
 0x2c0   :  { %v1305_v5 = vpop.f32.mrf.mxu0  ;;  %v2949_v0 = vpop.f32.mrf.mxu1 }
 0x2c1   :  { %v1547_v15 = vadd.f32 %v1546_v37, %v1305_v5 }
 0x2c2   :  { %v1309_v52 = vpop.f32.mrf.mxu0  ;;  %v2951_v53 = vpop.f32.mrf.mxu1 }
 0x2c3   :  { %v1551_v6 = vadd.f32 %v1550_v47, %v1309_v52 }
 0x2c4   :  { %v1311_v16 = vpop.f32.mrf.mxu0  ;;  %v2953_v54 = vpop.f32.mrf.mxu1 }
 0x2c5   :  { %v1553_v51 = vadd.f32 %v1552_v50, %v1311_v16 }
 0x2c6   :  { %v1313_v55 = vpop.f32.mrf.mxu0  ;;  %v2955_v56 = vpop.f32.mrf.mxu1 }
 0x2c7   :  { %v1555_v47 = vadd.f32 %v2943_v46, %v1313_v55 }
 0x2c8   :  { %v1315_v57 = vpop.f32.mrf.mxu0  ;;  %v2957_v23 = vpop.f32.mrf.mxu1 }
 0x2c9   :  { %v1557_v59 = vadd.f32 %v2945_v58, %v1315_v57 }
 0x2ca   :  { %v1319_v9 = vpop.f32.mrf.mxu0  ;;  %v2959_v27 = vpop.f32.mrf.mxu1 }
 0x2cb   :  { %v2961_v60 = vadd.f32 %v1560_v22, %v1319_v9 }
 0x2cc   :  { %v1321_v25 = vpop.f32.mrf.mxu0  ;;  %v2963_v62 = vpop.f32.mrf.mxu1 }
 0x2cd   :  { %v2965_v28 = vadd.f32 %v1562_v42, %v1321_v25 }
 0x2ce   :  { %v2967_v48 = vpop.f32.mrf.mxu0  ;;  %v1584_v30 = vpop.f32.mrf.mxu1 }
 0x2d0   :  { %v2969_v32 = vpop.f32.mrf.mxu0  ;;  %v1585_v61 = vpop.f32.mrf.mxu1 }
 0x2d2   :  { %v2971_v63 = vpop.f32.mrf.mxu0 }
 0x2d4   :  { %v2973_v33 = vpop.f32.mrf.mxu0 }
 0x2d6   :  { %v2975_v35 = vpop.f32.mrf.mxu0 }
 0x2d8   :  { %v2977_v36 = vpop.f32.mrf.mxu0 }
 0x2da   :  { %v2979_v39 = vpop.f32.mrf.mxu0 }
 0x2dc   :  { %v2981_v40 = vpop.f32.mrf.mxu0 }
 0x2de   :  { %v1343_v13 = vpop.f32.mrf.mxu0 }
 0x2e0   :  { %v1344_v41 = vpop.f32.mrf.mxu0 }
 0x2e1   :  { %v1565_v41 = vadd.f32 %v2947_v24, %v2967_v48 }
 0x2fa   :  { %v1861_v1 = vpop.f32.mrf.mxu0 }
 0x2fb   :  { %v1908_v4 = vadd.f32 %v1861_v1, %v1541_v21 }
 0x2fc   :  { %v1863_v43 = vpop.f32.mrf.mxu0 }
 0x2fd   :  { %v1938_v44 = vadd.f32 %v2988_v38, %v1908_v4  ;;  %v1909_v10 = vadd.f32 %v1863_v43, %v1543_v3  ;;  %v1567_v4 = vadd.f32 %v2949_v0, %v2969_v32  ;;  %v1573_v0 = vadd.f32 %v2953_v54, %v2973_v33 }
 0x2fe   :  { %v1865_v45 = vpop.f32.mrf.mxu0 }
 0x2ff   :  { %v1956_v17 = vmax.f32 %v1938_v44, 0.0  ;;  %v1939_v19 = vadd.f32 %v2992_v8, %v1909_v10  ;;  %v1910_v20 = vadd.f32 %v1865_v45, %v1545_v2  ;;  %v1571_v2 = vadd.f32 %v2951_v53, %v2971_v63 }
 0x300   :  { %v1867_v31 = vpop.f32.mrf.mxu0  ;;  %v1575_v63 = vadd.f32 %v2955_v56, %v2975_v35 }
 0x301   :  { %1974 = vst [vmem:[%s3095_s7] sm:$0xff] %v1956_v17  ;;  %v1957_v26 = vmax.f32 %v1939_v19, 0.0  ;;  %v1940_v34 = vadd.f32 %v2988_v38, %v1910_v20  ;;  %v1911_v14 = vadd.f32 %v1867_v31, %v1547_v15 }
 0x302   :  { %v1871_v29 = vpop.f32.mrf.mxu0 }
 0x303   :  { %1975 = vst [vmem:[%s3095_s7 + $0x8] sm:$0xff] %v1957_v26  ;;  %v1958_v11 = vmax.f32 %v1940_v34, 0.0  ;;  %v1941_v49 = vadd.f32 %v2992_v8, %v1911_v14  ;;  %v1912_v37 = vadd.f32 %v1871_v29, %v1551_v6  ;;  %v1577_v34 = vadd.f32 %v2957_v23, %v2977_v36 }
 0x304   :  { %v1873_v12 = vpop.f32.mrf.mxu0 }
 0x305   :  { %1976 = vst [vmem:[%s3095_s7 + $0x10] sm:$0xff] %v1958_v11  ;;  %v1959_v22 = vmax.f32 %v1941_v49, 0.0  ;;  %v1942_v7 = vadd.f32 %v2988_v38, %v1912_v37  ;;  %v1913_v42 = vadd.f32 %v1873_v12, %v1553_v51  ;;  %v1581_v49 = vadd.f32 %v2959_v27, %v2979_v39 }
 0x306   :  { %v1875_v50 = vpop.f32.mrf.mxu0 }
 0x307   :  { %1977 = vst [vmem:[%s3095_s7 + $0x18] sm:$0xff] %v1959_v22  ;;  %v1960_v5 = vmax.f32 %v1942_v7, 0.0  ;;  %v1943_v52 = vadd.f32 %v2992_v8, %v1913_v42  ;;  %v1914_v16 = vadd.f32 %v1875_v50, %v1555_v47  ;;  %v1583_v47 = vadd.f32 %v2963_v62, %v2981_v40 }
 0x308   :  { %v1877_v46 = vpop.f32.mrf.mxu0 }
 0x309   :  { %1978 = vst [vmem:[%s3095_s7 + $0x20] sm:$0xff] %v1960_v5  ;;  %v1961_v55 = vmax.f32 %v1943_v52, 0.0  ;;  %v1944_v9 = vadd.f32 %v2988_v38, %v1914_v16  ;;  %v1915_v25 = vadd.f32 %v1877_v46, %v1557_v59 }
 0x30a   :  { %v1881_v30 = vpop.f32.mrf.mxu0 }
 0x30b   :  { %1979 = vst [vmem:[%s3095_s7 + $0x28] sm:$0xff] %v1961_v55  ;;  %v1962_v58 = vmax.f32 %v1944_v9, 0.0  ;;  %v1945_v57 = vadd.f32 %v2992_v8, %v1915_v25  ;;  %v1916_v61 = vadd.f32 %v1881_v30, %v2961_v60 }
 0x30c   :  { %v1883_v13 = vpop.f32.mrf.mxu0 }
 0x30d   :  { %1980 = vst [vmem:[%s3095_s7 + $0x30] sm:$0xff] %v1962_v58  ;;  %v1963_v18 = vmax.f32 %v1945_v57, 0.0  ;;  %v1946_v21 = vadd.f32 %v2988_v38, %v1916_v61  ;;  %v1917_v1 = vadd.f32 %v1883_v13, %v2965_v28 }
 0x30e   :  { %v1885_v3 = vpop.f32.mrf.mxu0 }
 0x30f   :  { %1981 = vst [vmem:[%s3095_s7 + $0x38] sm:$0xff] %v1963_v18  ;;  %v1947_v60 = vadd.f32 %v2992_v8, %v1917_v1  ;;  %v1918_v24 = vadd.f32 %v1885_v3, %v1565_v41  ;;  %v1964_v48 = vmax.f32 %v1946_v21, 0.0 }
 0x310   :  { %v1887_v43 = vpop.f32.mrf.mxu0 }
 0x311   :  { %v1948_v44 = vadd.f32 %v2988_v38, %v1918_v24  ;;  %v1919_v10 = vadd.f32 %v1887_v43, %v1567_v4  ;;  %v1965_v28 = vmax.f32 %v1947_v60, 0.0  ;;  %v1993_v19 = vrot.slane %v1964_v48, 2 }
 0x312   :  { %v1891_v45 = vpop.f32.mrf.mxu0 }
 0x313   :  { %v1966_v32 = vmax.f32 %v1948_v44, 0.0  ;;  %v1949_v15 = vadd.f32 %v2992_v8, %v1919_v10  ;;  %v1920_v17 = vadd.f32 %v1891_v45, %v1571_v2  ;;  %v1996_v14 = vrot.slane %v1965_v28, 2 }
 0x314   :  { %v1893_v20 = vpop.f32.mrf.mxu0 }
 0x315   :  { %v1994_v31 = vrot.slane %v1966_v32, 2  ;;  %v1967_v6 = vmax.f32 %v1949_v15, 0.0  ;;  %v1950_v26 = vadd.f32 %v2988_v38, %v1920_v17  ;;  %v1921_v53 = vadd.f32 %v1893_v20, %v1573_v0 }
 0x316   :  { %v1895_v54 = vpop.f32.mrf.mxu0 }
 0x317   :  { %v1995_v33 = vsel %vm1992_vm8, %v1993_v19, %v1994_v31  ;;  %v1997_v29 = vrot.slane %v1967_v6, 2  ;;  %v1968_v51 = vmax.f32 %v1950_v26, 0.0  ;;  %v1951_v11 = vadd.f32 %v2992_v8, %v1921_v53 }
 0x318   :  { %2193 = vst [vmem:[%s3095_s7 + $0x40] sm:$0xff] %v1995_v33  ;;  %v1922_v37 = vadd.f32 %v1895_v54, %v1575_v63  ;;  %v1897_v56 = vpop.f32.mrf.mxu0 }
 0x319   :  { %v1998_v35 = vsel %vm1992_vm8, %v1996_v14, %v1997_v29  ;;  %v1999_v23 = vrot.slane %v1968_v51, 2  ;;  %v1969_v36 = vmax.f32 %v1951_v11, 0.0  ;;  %v1923_v12 = vadd.f32 %v1897_v56, %v1577_v34 }
 0x31a   :  { %2194 = vst [vmem:[%s3095_s7 + $0x48] sm:$0xff] %v1998_v35  ;;  %v1952_v27 = vadd.f32 %v2988_v38, %v1922_v37  ;;  %v1901_v39 = vpop.f32.mrf.mxu0 }
 0x31b   :  { %v2000_v22 = vsel %vm1992_vm8, %v1994_v31, %v1999_v23  ;;  %v2001_v7 = vrot.slane %v1969_v36, 2  ;;  %v1953_v42 = vadd.f32 %v2992_v8, %v1923_v12  ;;  %v1924_v50 = vadd.f32 %v1901_v39, %v1581_v49 }
 0x31c   :  { %2195 = vst [vmem:[%s3095_s7 + $0x50] sm:$0xff] %v2000_v22  ;;  %v1970_v59 = vmax.f32 %v1952_v27, 0.0  ;;  %v1903_v5 = vpop.f32.mrf.mxu0 }
 0x31d   :  { %v2002_v62 = vsel %vm1992_vm8, %v1997_v29, %v2001_v7  ;;  %v1971_v40 = vmax.f32 %v1953_v42, 0.0  ;;  %v1954_v52 = vadd.f32 %v2988_v38, %v1924_v50  ;;  %v1925_v16 = vadd.f32 %v1903_v5, %v1583_v47 }
 0x31e   :  { %2196 = vst [vmem:[%s3095_s7 + $0x58] sm:$0xff] %v2002_v62  ;;  %v2003_v46 = vrot.slane %v1970_v59, 2  ;;  %v1905_v55 = vpop.f32.mrf.mxu0 }
 0x31f   :  { %v2005_v9 = vrot.slane %v1971_v40, 2  ;;  %v1972_v25 = vmax.f32 %v1954_v52, 0.0  ;;  %v1955_v30 = vadd.f32 %v2992_v8, %v1925_v16 }
 0x320   :  { %v2004_v58 = vsel %vm1992_vm8, %v1999_v23, %v2003_v46  ;;  %v1906_v57 = vpop.f32.mrf.mxu0 }
 0x321   :  { %2197 = vst [vmem:[%s3095_s7 + $0x60] sm:$0xff] %v2004_v58  ;;  %v2006_v38 = vsel %vm1992_vm8, %v2001_v7, %v2005_v9  ;;  %v2007_v61 = vrot.slane %v1972_v25, 2  ;;  %v1973_v13 = vmax.f32 %v1955_v30, 0.0 }
 0x322   :  { %2198 = vst [vmem:[%s3095_s7 + $0x68] sm:$0xff] %v2006_v38 }
 0x323   :  { %v2008_v41 = vsel %vm1992_vm8, %v2003_v46, %v2007_v61  ;;  %v2009_v18 = vrot.slane %v1973_v13, 2 }
 0x324   :  { %2199 = vst [vmem:[%s3095_s7 + $0x70] sm:$0xff] %v2008_v41 }
 0x325   :  { %v2010_v8 = vsel %vm1992_vm8, %v2005_v9, %v2009_v18 }
 0x326   :  { %2200 = vst [vmem:[%s3095_s7 + $0x78] sm:$0xff] %v2010_v8 }
 0x327   :  { %2032 = vsyncpa [#allocation5], 1 }

</bundles_post_ra>
